<compile_context>
chip_gen: v6e
topology: v6e:2x2x1
jax: 0.10.0
libtpu: 0.0.40
codegen_flags: <defaults>
</compile_context>

<pallas_src>
import functools

import jax
import jax.numpy as jnp
from jax import lax
from jax.experimental import pallas as pl
from jax.experimental.pallas import tpu as pltpu


def _cdiv(a, b):
    return (a + b - 1) // b


def _round_up(x, m):
    return _cdiv(x, m) * m


def _infonce_kernel(q_ref, k_ref, neg_ref, out_ref,
                    m_ref, s_ref, pos_ref, scale_ref, *,
                    inv_temperature, num_negatives, block_n,
                    needs_mask, mxu_precision):
    """One (B-tile, N-tile) step of the streamed InfoNCE loss.

    q_ref, k_ref : (TB, 1, D)   query / key tiles (same block for every N step)
    neg_ref      : (TB, TN, D)  tile of negatives
    out_ref      : (TB, 1, 1)   per-row loss, written on the last N step
    m/s/pos/scale: (TB, 1, 1)   VMEM running max / running sum-exp /
                                positive logit / 1/(|q|*T)
    """
    eps2 = jnp.float32(1e-24)          # eps**2, eps = 1e-12 (torch F.normalize)
    inv_t = jnp.float32(inv_temperature)
    neg_fill = jnp.float32(-1e30)      # fill for padded / stale negative cols

    n_idx = pl.program_id(1)
    last = pl.num_programs(1) - 1

    q = q_ref[...]                                            # (TB, 1, D)

    @pl.when(n_idx == 0)
    def _init():
        qf = q.astype(jnp.float32)
        kf = k_ref[...].astype(jnp.float32)
        inv_q = lax.rsqrt(jnp.maximum(
            jnp.sum(qf * qf, axis=2, keepdims=True), eps2))   # (TB, 1, 1)
        inv_k = lax.rsqrt(jnp.maximum(
            jnp.sum(kf * kf, axis=2, keepdims=True), eps2))
        pos = jnp.sum(qf * kf, axis=2, keepdims=True) * inv_q * inv_k * inv_t
        scale_ref[...] = inv_q * inv_t
        pos_ref[...] = pos
        m_ref[...] = pos                 # fold positive logit into running max
        s_ref[...] = jnp.ones_like(pos)  # exp(pos - pos) = 1

    # Negative logits for this tile on the MXU, without materializing the
    # normalized negatives:
    #   logit[b, n] = <neg[b,n], q[b]> * rsqrt(|neg[b,n]|^2) * 1/(|q[b]| * T)
    neg = neg_ref[...]                                        # (TB, TN, D)
    raw = jnp.einsum("bqd,bnd->bqn", q, neg,
                     preferred_element_type=jnp.float32,
                     precision=mxu_precision)                 # (TB, 1, TN)
    sumsq = jnp.einsum("bqd,bnd->bqn", jnp.ones_like(q), neg * neg,
                       preferred_element_type=jnp.float32,
                       precision=mxu_precision)               # (TB, 1, TN)
    logits = raw * lax.rsqrt(jnp.maximum(sumsq, eps2)) * scale_ref[...]

    def _update(lg):
        m_prev = m_ref[...]
        m_new = jnp.maximum(m_prev, jnp.max(lg, axis=2, keepdims=True))
        s_ref[...] = (s_ref[...] * jnp.exp(m_prev - m_new)
                      + jnp.sum(jnp.exp(lg - m_new), axis=2, keepdims=True))
        m_ref[...] = m_new

    if needs_mask:
        # Only the last N tile can contain out-of-range (stale) columns; keep
        # the interior steps free of the compare+select.
        @pl.when(n_idx != last)
        def _interior():
            _update(logits)

        @pl.when(n_idx == last)
        def _tail():
            col = (lax.broadcasted_iota(jnp.int32, logits.shape, 2)
                   + n_idx * block_n)
            _update(jnp.where(col < num_negatives, logits, neg_fill))
    else:
        _update(logits)

    @pl.when(n_idx == last)
    def _finalize():
        # per-row cross-entropy with label 0: logsumexp(all logits) - pos
        out_ref[...] = m_ref[...] + jnp.log(s_ref[...]) - pos_ref[...]


def infonce_loss(query, key, negatives, temperature=0.07, *,
                 block_n=None, block_b=None):
    """query: (B, D), key: (B, D), negatives: (B, N, D) -> scalar f32 loss."""
    b, d = query.shape
    _, n, _ = negatives.shape
    dtype = negatives.dtype
    itemsize = jnp.dtype(dtype).itemsize

    # Generation-aware tile budget (v7x has only 64 MiB VMEM per TensorCore).
    try:
        vmem_cap = int(pltpu.get_tpu_info().vmem_capacity_bytes)
    except Exception:  # interpret mode / older runtimes
        vmem_cap = 64 << 20
    tile_budget = (6 << 20) if vmem_cap <= (64 << 20) else (8 << 20)

    # Batch tile.  q/k are passed as (B, 1, D) so TB is a leading block dim and
    # needs no (8,128) alignment; keep >=2 B tiles when b > 8 so the "parallel"
    # axis can be split across both TensorCores on v7x.
    if block_b is not None:
        tb = max(1, min(int(block_b), b))
    elif b <= 8:
        tb = b
    else:
        tb = min(64, _round_up(_cdiv(b, 2), 8))
    nb = _cdiv(b, tb)
    b_pad = nb * tb

    # N tile: a multiple of 8 (or the full N).  The big negatives tensor is
    # never padded or copied; a partial trailing tile is masked in-kernel.
    cap_tn = max(8, (tile_budget // max(1, tb * d * itemsize)) // 8 * 8)
    if block_n is not None:
        tn = n if int(block_n) >= n else max(8, (int(block_n) // 8) * 8)
    elif n <= cap_tn:
        tn = n
    else:
        tn = min(_round_up(_cdiv(n, _cdiv(n, cap_tn)), 8), _round_up(cap_tn, 8))
    n_tiles = _cdiv(n, tn)
    needs_mask = (n_tiles * tn != n)

    # Only the tiny q/k tensors get reshaped / B-padded (rows >= b produce
    # garbage that stays confined to their own rows and is dropped below).
    q3 = query.reshape(b, 1, d)
    k3 = key.reshape(b, 1, d)
    if b_pad != b:
        q3 = jnp.pad(q3, ((0, b_pad - b), (0, 0), (0, 0)))
        k3 = jnp.pad(k3, ((0, b_pad - b), (0, 0), (0, 0)))

    # f32 inputs: exact MXU passes so results match the f32 reference closely;
    # bf16 inputs: native bf16 MXU matmul with f32 accumulation.
    mxu_precision = (lax.Precision.HIGHEST if dtype == jnp.float32
                     else lax.Precision.DEFAULT)

    kernel = functools.partial(
        _infonce_kernel,
        inv_temperature=float(1.0 / temperature),
        num_negatives=n,
        block_n=tn,
        needs_mask=needs_mask,
        mxu_precision=mxu_precision,
    )

    tile_bytes = tb * tn * d * itemsize
    vmem_limit = int(min(vmem_cap * 3 // 4,
                         max(32 << 20, 3 * tile_bytes + (8 << 20))))

    per_row = pl.pallas_call(
        kernel,
        out_shape=jax.ShapeDtypeStruct((b_pad, 1, 1), jnp.float32),
        grid_spec=pltpu.PrefetchScalarGridSpec(
            num_scalar_prefetch=0,
            grid=(nb, n_tiles),
            in_specs=[
                pl.BlockSpec((tb, 1, d), lambda bi, ni: (bi, 0, 0)),
                pl.BlockSpec((tb, 1, d), lambda bi, ni: (bi, 0, 0)),
                pl.BlockSpec((tb, tn, d), lambda bi, ni: (bi, ni, 0)),
            ],
            out_specs=pl.BlockSpec((tb, 1, 1), lambda bi, ni: (bi, 0, 0)),
            scratch_shapes=[
                pltpu.VMEM((tb, 1, 1), jnp.float32),   # running max
                pltpu.VMEM((tb, 1, 1), jnp.float32),   # running sum-exp
                pltpu.VMEM((tb, 1, 1), jnp.float32),   # positive logit
                pltpu.VMEM((tb, 1, 1), jnp.float32),   # 1 / (|q| * T)
            ],
        ),
        compiler_params=pltpu.CompilerParams(
            dimension_semantics=("parallel", "arbitrary"),
            vmem_limit_bytes=vmem_limit,
        ),
    )(q3, k3, negatives)

    return jnp.mean(per_row[:b, 0, 0])


def _reference_loss(query, key, negatives, temperature=0.07):
    eps = 1e-12
    qn = query / jnp.maximum(jnp.linalg.norm(query, axis=1, keepdims=True), eps)
    kn = key / jnp.maximum(jnp.linalg.norm(key, axis=1, keepdims=True), eps)
    nn_ = negatives / jnp.maximum(
        jnp.linalg.norm(negatives, axis=2, keepdims=True), eps)
    pos = jnp.sum(qn * kn, axis=1) / temperature                     # (B,)
    neg = jnp.einsum("bnd,bd->bn", nn_, qn,
                     precision=lax.Precision.HIGHEST) / temperature  # (B, N)
    logits = jnp.concatenate([pos[:, None], neg], axis=1)            # (B, 1+N)
    lse = jax.scipy.special.logsumexp(logits, axis=1)
    return jnp.mean(lse - logits[:, 0])


if __name__ == "__main__":
    batch, num_negatives, d_model = 6, 12, 32
    temperature = 0.07

    k0, k1, k2 = jax.random.split(jax.random.PRNGKey(0), 3)
    query = jax.random.normal(k0, (batch, d_model), dtype=jnp.float32)
    key = jax.random.normal(k1, (batch, d_model), dtype=jnp.float32)
    negatives = jax.random.normal(
        k2, (batch, num_negatives, d_model), dtype=jnp.float32)

    ref = _reference_loss(query, key, negatives, temperature)

    # Default tiling: single N tile at this size.
    loss = jax.block_until_ready(
        infonce_loss(query, key, negatives, temperature))
    assert jnp.allclose(loss, ref, atol=2e-3, rtol=2e-3), (loss, ref)

    # Multi-tile path: streams the negatives across two N tiles with a partial
    # (masked) trailing tile, exercising the online logsumexp and the mask.
    loss_tiled = jax.block_until_ready(
        infonce_loss(query, key, negatives, temperature, block_n=8))
    assert jnp.allclose(loss_tiled, ref, atol=2e-3, rtol=2e-3), (loss_tiled, ref)

    print("KERNEL_OK")
</pallas_src>

<mosaic_0001>
module attributes {stable_mosaic.version = 11 : i64} {
  func.func @_infonce_kernel(%arg0: i32, %arg1: i32, %arg2: memref<6x1x32xf32, #tpu.memory_space<vmem>>, %arg3: memref<6x1x32xf32, #tpu.memory_space<vmem>>, %arg4: memref<6x12x32xf32, #tpu.memory_space<vmem>>, %arg5: memref<6x1x1xf32, #tpu.memory_space<vmem>>, %arg6: memref<6x1x1xf32, #tpu.memory_space<vmem>>, %arg7: memref<6x1x1xf32, #tpu.memory_space<vmem>>, %arg8: memref<6x1x1xf32, #tpu.memory_space<vmem>>, %arg9: memref<6x1x1xf32, #tpu.memory_space<vmem>>) attributes {dimension_semantics = [#tpu.dimension_semantics<parallel>, #tpu.dimension_semantics<arbitrary>], iteration_bounds = array<i64: 1, 1>, scalar_prefetch = 0 : i64, scratch_operands = 4 : i64, tpu.core_type = #tpu.core_type<tc>, window_params = [{transform_indices = @transform_0, window_bounds = array<i64: 6, 1, 32>}, {transform_indices = @transform_1, window_bounds = array<i64: 6, 1, 32>}, {transform_indices = @transform_2, window_bounds = array<i64: 6, 12, 32>}, {transform_indices = @transform_3, window_bounds = array<i64: 6, 1, 1>}]} {
    %c0 = arith.constant 0 : index
    %c0_0 = arith.constant 0 : index
    %c0_1 = arith.constant 0 : index
    %0 = vector.load %arg2[%c0, %c0_0, %c0_1] : memref<6x1x32xf32, #tpu.memory_space<vmem>>, vector<6x1x32xf32>
    %c0_i32 = arith.constant 0 : i32
    %1 = arith.cmpi eq, %arg1, %c0_i32 : i32
    %2 = arith.extui %1 : i1 to i32
    %cst = arith.constant 1.000000e-24 : f32
    %cst_2 = arith.constant 14.2857141 : f32
    %c0_i32_3 = arith.constant 0 : i32
    %3 = arith.cmpi ne, %2, %c0_i32_3 : i32
    scf.if %3 {
      %c0_30 = arith.constant 0 : index
      %c0_31 = arith.constant 0 : index
      %c0_32 = arith.constant 0 : index
      %35 = vector.load %arg3[%c0_30, %c0_31, %c0_32] : memref<6x1x32xf32, #tpu.memory_space<vmem>>, vector<6x1x32xf32>
      %36 = arith.mulf %0, %0 : vector<6x1x32xf32>
      %cst_33 = arith.constant dense<0.000000e+00> : vector<6x1xf32>
      %37 = vector.multi_reduction <add>, %36, %cst_33 [2] : vector<6x1x32xf32> to vector<6x1xf32>
      %38 = vector.shape_cast %37 : vector<6x1xf32> to vector<6x1x1xf32>
      %39 = vector.broadcast %cst : f32 to vector<6x1x1xf32>
      %40 = arith.maximumf %38, %39 : vector<6x1x1xf32>
      %41 = math.rsqrt %40 : vector<6x1x1xf32>
      %42 = arith.mulf %35, %35 : vector<6x1x32xf32>
      %cst_34 = arith.constant dense<0.000000e+00> : vector<6x1xf32>
      %43 = vector.multi_reduction <add>, %42, %cst_34 [2] : vector<6x1x32xf32> to vector<6x1xf32>
      %44 = vector.shape_cast %43 : vector<6x1xf32> to vector<6x1x1xf32>
      %45 = vector.broadcast %cst : f32 to vector<6x1x1xf32>
      %46 = arith.maximumf %44, %45 : vector<6x1x1xf32>
      %47 = math.rsqrt %46 : vector<6x1x1xf32>
      %48 = arith.mulf %0, %35 : vector<6x1x32xf32>
      %cst_35 = arith.constant dense<0.000000e+00> : vector<6x1xf32>
      %49 = vector.multi_reduction <add>, %48, %cst_35 [2] : vector<6x1x32xf32> to vector<6x1xf32>
      %50 = vector.shape_cast %49 : vector<6x1xf32> to vector<6x1x1xf32>
      %51 = arith.mulf %50, %41 : vector<6x1x1xf32>
      %52 = arith.mulf %51, %47 : vector<6x1x1xf32>
      %53 = vector.broadcast %cst_2 : f32 to vector<6x1x1xf32>
      %54 = arith.mulf %52, %53 : vector<6x1x1xf32>
      %55 = vector.broadcast %cst_2 : f32 to vector<6x1x1xf32>
      %56 = arith.mulf %41, %55 : vector<6x1x1xf32>
      %c0_36 = arith.constant 0 : index
      %c0_37 = arith.constant 0 : index
      %c0_38 = arith.constant 0 : index
      %57 = vector.load %arg9[%c0_36, %c0_37, %c0_38] : memref<6x1x1xf32, #tpu.memory_space<vmem>>, vector<6x1x1xf32>
      tpu.vector_store %arg9[%c0_36, %c0_37, %c0_38], %56 {strides = array<i32>} : memref<6x1x1xf32, #tpu.memory_space<vmem>>, vector<6x1x1xf32>,
      %c0_39 = arith.constant 0 : index
      %c0_40 = arith.constant 0 : index
      %c0_41 = arith.constant 0 : index
      %58 = vector.load %arg8[%c0_39, %c0_40, %c0_41] : memref<6x1x1xf32, #tpu.memory_space<vmem>>, vector<6x1x1xf32>
      tpu.vector_store %arg8[%c0_39, %c0_40, %c0_41], %54 {strides = array<i32>} : memref<6x1x1xf32, #tpu.memory_space<vmem>>, vector<6x1x1xf32>,
      %c0_42 = arith.constant 0 : index
      %c0_43 = arith.constant 0 : index
      %c0_44 = arith.constant 0 : index
      %59 = vector.load %arg6[%c0_42, %c0_43, %c0_44] : memref<6x1x1xf32, #tpu.memory_space<vmem>>, vector<6x1x1xf32>
      tpu.vector_store %arg6[%c0_42, %c0_43, %c0_44], %54 {strides = array<i32>} : memref<6x1x1xf32, #tpu.memory_space<vmem>>, vector<6x1x1xf32>,
      %cst_45 = arith.constant 1.000000e+00 : f32
      %60 = vector.broadcast %cst_45 : f32 to vector<6x1x1xf32>
      %c0_46 = arith.constant 0 : index
      %c0_47 = arith.constant 0 : index
      %c0_48 = arith.constant 0 : index
      %61 = vector.load %arg7[%c0_46, %c0_47, %c0_48] : memref<6x1x1xf32, #tpu.memory_space<vmem>>, vector<6x1x1xf32>
      tpu.vector_store %arg7[%c0_46, %c0_47, %c0_48], %60 {strides = array<i32>} : memref<6x1x1xf32, #tpu.memory_space<vmem>>, vector<6x1x1xf32>,
    } else {
    }
    %c0_4 = arith.constant 0 : index
    %c0_5 = arith.constant 0 : index
    %c0_6 = arith.constant 0 : index
    %4 = vector.load %arg4[%c0_4, %c0_5, %c0_6] : memref<6x12x32xf32, #tpu.memory_space<vmem>>, vector<6x12x32xf32>
    "tpu.trace_start"() <{level = 10 : i32, message = "bqd,bnd->bqn"}> : () -> ()
    %cst_7 = arith.constant dense<0.000000e+00> : vector<6x1x12xf32>
    %5 = tpu.matmul %0, %4, %cst_7 {dimension_numbers = #tpu.dot_dimension_numbers<[2], [2], [1], [1], [0, 0, 0, 1, 1, 1], [0], [0]>, precision = #tpu.contract_precision<fp32>} : vector<6x1x32xf32>, vector<6x12x32xf32>, vector<6x1x12xf32> -> vector<6x1x12xf32>
    %cst_8 = arith.constant 1.000000e+00 : f32
    "tpu.trace_stop"() : () -> ()
    %6 = vector.broadcast %cst_8 : f32 to vector<6x1x32xf32>
    %7 = arith.mulf %4, %4 : vector<6x12x32xf32>
    "tpu.trace_start"() <{level = 10 : i32, message = "bqd,bnd->bqn"}> : () -> ()
    %cst_9 = arith.constant dense<0.000000e+00> : vector<6x1x12xf32>
    %8 = tpu.matmul %6, %7, %cst_9 {dimension_numbers = #tpu.dot_dimension_numbers<[2], [2], [1], [1], [0, 0, 0, 1, 1, 1], [0], [0]>, precision = #tpu.contract_precision<fp32>} : vector<6x1x32xf32>, vector<6x12x32xf32>, vector<6x1x12xf32> -> vector<6x1x12xf32>
    "tpu.trace_stop"() : () -> ()
    %cst_10 = arith.constant 1.000000e-24 : f32
    %9 = vector.broadcast %cst_10 : f32 to vector<6x1x12xf32>
    %10 = arith.maximumf %8, %9 : vector<6x1x12xf32>
    %11 = math.rsqrt %10 : vector<6x1x12xf32>
    %12 = arith.mulf %5, %11 : vector<6x1x12xf32>
    %c0_11 = arith.constant 0 : index
    %c0_12 = arith.constant 0 : index
    %c0_13 = arith.constant 0 : index
    %13 = vector.load %arg9[%c0_11, %c0_12, %c0_13] : memref<6x1x1xf32, #tpu.memory_space<vmem>>, vector<6x1x1xf32>
    %14 = vector.broadcast %13 : vector<6x1x1xf32> to vector<6x1x12xf32>
    %15 = arith.mulf %12, %14 : vector<6x1x12xf32>
    %c0_14 = arith.constant 0 : index
    %c0_15 = arith.constant 0 : index
    %c0_16 = arith.constant 0 : index
    %16 = vector.load %arg6[%c0_14, %c0_15, %c0_16] : memref<6x1x1xf32, #tpu.memory_space<vmem>>, vector<6x1x1xf32>
    %cst_17 = arith.constant dense<0xFF800000> : vector<6x1xf32>
    %17 = vector.multi_reduction <maximumf>, %15, %cst_17 [2] : vector<6x1x12xf32> to vector<6x1xf32>
    %18 = vector.shape_cast %17 : vector<6x1xf32> to vector<6x1x1xf32>
    %19 = arith.maximumf %16, %18 : vector<6x1x1xf32>
    %c0_18 = arith.constant 0 : index
    %c0_19 = arith.constant 0 : index
    %c0_20 = arith.constant 0 : index
    %20 = vector.load %arg7[%c0_18, %c0_19, %c0_20] : memref<6x1x1xf32, #tpu.memory_space<vmem>>, vector<6x1x1xf32>
    %21 = arith.subf %16, %19 : vector<6x1x1xf32>
    %22 = math.exp %21 : vector<6x1x1xf32>
    %23 = arith.mulf %20, %22 : vector<6x1x1xf32>
    %24 = vector.broadcast %19 : vector<6x1x1xf32> to vector<6x1x12xf32>
    %25 = arith.subf %15, %24 : vector<6x1x12xf32>
    %26 = math.exp %25 : vector<6x1x12xf32>
    %cst_21 = arith.constant dense<0.000000e+00> : vector<6x1xf32>
    %27 = vector.multi_reduction <add>, %26, %cst_21 [2] : vector<6x1x12xf32> to vector<6x1xf32>
    %28 = vector.shape_cast %27 : vector<6x1xf32> to vector<6x1x1xf32>
    %29 = arith.addf %23, %28 : vector<6x1x1xf32>
    %c0_22 = arith.constant 0 : index
    %c0_23 = arith.constant 0 : index
    %c0_24 = arith.constant 0 : index
    %30 = vector.load %arg7[%c0_22, %c0_23, %c0_24] : memref<6x1x1xf32, #tpu.memory_space<vmem>>, vector<6x1x1xf32>
    tpu.vector_store %arg7[%c0_22, %c0_23, %c0_24], %29 {strides = array<i32>} : memref<6x1x1xf32, #tpu.memory_space<vmem>>, vector<6x1x1xf32>,
    %c0_25 = arith.constant 0 : index
    %c0_26 = arith.constant 0 : index
    %c0_27 = arith.constant 0 : index
    %31 = vector.load %arg6[%c0_25, %c0_26, %c0_27] : memref<6x1x1xf32, #tpu.memory_space<vmem>>, vector<6x1x1xf32>
    tpu.vector_store %arg6[%c0_25, %c0_26, %c0_27], %19 {strides = array<i32>} : memref<6x1x1xf32, #tpu.memory_space<vmem>>, vector<6x1x1xf32>,
    %c0_i32_28 = arith.constant 0 : i32
    %32 = arith.cmpi eq, %arg1, %c0_i32_28 : i32
    %33 = arith.extui %32 : i1 to i32
    %c0_i32_29 = arith.constant 0 : i32
    %34 = arith.cmpi ne, %33, %c0_i32_29 : i32
    scf.if %34 {
      %c0_30 = arith.constant 0 : index
      %c0_31 = arith.constant 0 : index
      %c0_32 = arith.constant 0 : index
      %35 = vector.load %arg6[%c0_30, %c0_31, %c0_32] : memref<6x1x1xf32, #tpu.memory_space<vmem>>, vector<6x1x1xf32>
      %c0_33 = arith.constant 0 : index
      %c0_34 = arith.constant 0 : index
      %c0_35 = arith.constant 0 : index
      %36 = vector.load %arg7[%c0_33, %c0_34, %c0_35] : memref<6x1x1xf32, #tpu.memory_space<vmem>>, vector<6x1x1xf32>
      %37 = math.log %36 : vector<6x1x1xf32>
      %38 = arith.addf %35, %37 : vector<6x1x1xf32>
      %c0_36 = arith.constant 0 : index
      %c0_37 = arith.constant 0 : index
      %c0_38 = arith.constant 0 : index
      %39 = vector.load %arg8[%c0_36, %c0_37, %c0_38] : memref<6x1x1xf32, #tpu.memory_space<vmem>>, vector<6x1x1xf32>
      %40 = arith.subf %38, %39 : vector<6x1x1xf32>
      %c0_39 = arith.constant 0 : index
      %c0_40 = arith.constant 0 : index
      %c0_41 = arith.constant 0 : index
      %41 = vector.load %arg5[%c0_39, %c0_40, %c0_41] : memref<6x1x1xf32, #tpu.memory_space<vmem>>, vector<6x1x1xf32>
      tpu.vector_store %arg5[%c0_39, %c0_40, %c0_41], %40 {strides = array<i32>} : memref<6x1x1xf32, #tpu.memory_space<vmem>>, vector<6x1x1xf32>,
    } else {
    }
    return
  }
  func.func @transform_0(%arg0: i32, %arg1: i32) -> (i32, i32, i32) {
    %c0_i32 = arith.constant 0 : i32
    %c0_i32_0 = arith.constant 0 : i32
    %c0_i32_1 = arith.constant 0 : i32
    return %arg0, %c0_i32, %c0_i32_0 : i32, i32, i32
  }
  func.func @transform_1(%arg0: i32, %arg1: i32) -> (i32, i32, i32) {
    %c0_i32 = arith.constant 0 : i32
    %c0_i32_0 = arith.constant 0 : i32
    %c0_i32_1 = arith.constant 0 : i32
    return %arg0, %c0_i32, %c0_i32_0 : i32, i32, i32
  }
  func.func @transform_2(%arg0: i32, %arg1: i32) -> (i32, i32, i32) {
    %c0_i32 = arith.constant 0 : i32
    %c0_i32_0 = arith.constant 0 : i32
    return %arg0, %arg1, %c0_i32 : i32, i32, i32
  }
  func.func @transform_3(%arg0: i32, %arg1: i32) -> (i32, i32, i32) {
    %c0_i32 = arith.constant 0 : i32
    %c0_i32_0 = arith.constant 0 : i32
    %c0_i32_1 = arith.constant 0 : i32
    return %arg0, %c0_i32, %c0_i32_0 : i32, i32, i32
  }
}

</mosaic_0001>

<bundles_post_ra>
// kernel: tpu_custom_call.1
= control target key start
LH: loop header
LB: loop body
LE: loop exit
PB: predicated region body
PF: predicated region fallthrough
CT: control target
= control target key end

     0   :  { %8 = vsyncpa [#allocation7], 0  ;;  %s8144_s0 = inlined_call_operand.hbm [shape: f32[6,1,32], index: 0, kind: input, shape index: {}]   ;;  %s8145_s1 = inlined_call_operand.hbm [shape: f32[6,1,32], index: 1, kind: input, shape index: {}]   ;;  %s8146_s2 = inlined_call_operand.hbm [shape: f32[6,12,32], index: 2, kind: input, shape index: {}]   ;;  %s8147_s3 = inlined_call_operand.vmem [shape: f32[6,1,1], index: 3, kind: output, shape index: {}]  }
   0x1   :  { %9 = vsyncpa [#allocation9], 0  ;;  %s7047_s12 = smov [#allocation8]   ;;  %s7048_s14 = smov [#allocation6]  }
   0x2   :  { %s27_s13 = sshll.u32 %s7047_s12, 4  ;;  %s15_s15 = sshll.u32 %s7048_s14, 4  ;;  %s28_s13 = int_to_ptr.vmem [resolvable:$true] %s27_s13  ;;  %s16_s15 = int_to_ptr.vmem [resolvable:$true] %s15_s15 }
   0x3   :  { %s6991_s16 = scalar_lea.vmem %s28_s13, 96  ;;  %p6996_p1 = scmp.lt.s32.totalorder %s28_s13, %s28_s13 }
   0x4   :  { %p6992_p0 = scmp.ne.s32.totalorder %s28_s13, %s6991_s16  ;;  %p6997_p2 = scmp.lt.s32.totalorder %s6991_s16, %s6991_s16 }
   0x6   :  { %p6998_p3 = por %p6997_p2, %p6996_p1 }
   0x8   :  { %p6999_p4 = pnand %p6998_p3, %p6992_p0 }
   0xa   :  { %7002 = shalt.err (!%p6999_p4)
}
   0xb   :  { %s7049_s17 = smov 16   ;;  %s7050_s18 = smov 1  }
   0xc   :  { %33 = dma.hbm_to_vmem [thread:$0]  %s8145_s1, 96, %s28_s13, [#allocation9], %s7049_s17, %s7049_s17, %s7050_s18  }
   0xd   :  { %s7011_s21 = scalar_lea.vmem %s16_s15, 96  ;;  %p7016_p6 = scmp.lt.s32.totalorder %s16_s15, %s16_s15 }
   0xe   :  { %p7012_p5 = scmp.ne.s32.totalorder %s16_s15, %s7011_s21  ;;  %p7017_p7 = scmp.lt.s32.totalorder %s7011_s21, %s7011_s21 }
  0x10   :  { %p7018_p8 = por %p7017_p7, %p7016_p6 }
  0x12   :  { %p7019_p9 = pnand %p7018_p8, %p7012_p5 }
  0x14   :  { %7022 = shalt.err (!%p7019_p9)
}
  0x15   :  { %21 = dma.hbm_to_vmem [thread:$0]  %s8144_s0, 96, %s16_s15, [#allocation7], %s7049_s17, %s7049_s17, %s7050_s18  }
  0x16   :  { %s7051_s24 = smov [#allocation10]  }
  0x17   :  { %s39_s25 = sshll.u32 %s7051_s24, 4  ;;  %s40_s25 = int_to_ptr.vmem [resolvable:$true] %s39_s25 }
  0x18   :  { %s7031_s26 = scalar_lea.vmem %s40_s25, 1536  ;;  %p7036_p11 = scmp.lt.s32.totalorder %s40_s25, %s40_s25 }
  0x19   :  { %p7032_p10 = scmp.ne.s32.totalorder %s40_s25, %s7031_s26  ;;  %p7037_p12 = scmp.lt.s32.totalorder %s7031_s26, %s7031_s26 }
  0x1b   :  { %p7038_p13 = por %p7037_p12, %p7036_p11 }
  0x1d   :  { %p7039_p0 = pnand %p7038_p13, %p7032_p10 }
  0x1f   :  { %7042 = shalt.err (!%p7039_p0)
}
  0x20   :  { %s7052_s1 = smov 128   ;;  %s7053_s27 = smov 8  }
  0x21   :  { %45 = dma.hbm_to_vmem [thread:$0]  %s8146_s2, 1536, %s40_s25, [#allocation9], %s7052_s1, %s7052_s1, %s7053_s27  }
  0x22   :  { %7043 = dma.done.wait [#allocation7], 96  }
  0x23   :  { %7044 = vsyncadd [#allocation7], 4294967200 }
  0x24   :  { %7045 = dma.done.wait [#allocation9], 1632  }
  0x25   :  { %7046 = vsyncadd [#allocation9], 4294965664  ;;  %v7054_v0 = vmov 0.0   ;;  %vm7055_vm0 = vmmov 0   ;;  %vm229_vm1 = vcmask 261120   ;;  %vm77_vm2 = vcmask 253952  }
  0x26   :  { %6388 = vmatprep.subr.mxu0 %v7054_v0  ;;  %6395 = vmatprep.subr.mxu1 %v7054_v0  ;;  %v55_v1 = vld [vmem:[#allocation6] sm:$0x1]  ;;  %v7093_v2 = vld [vmem:[#allocation10 + $0x8] sm:$0xf]  ;;  %v56_v3 = vld [vmem:[#allocation6 + $0x1] sm:$0x1] }
  0x27   :  { %6392 = vmatprep.mubr.msk.f32.mxu0 %vm7055_vm0, %v7054_v0  ;;  %6399 = vmatprep.mubr.msk.f32.mxu1 %vm7055_vm0, %v7054_v0  ;;  %v71_v4 = vmul.f32 %v55_v1, %v55_v1  ;;  %v231_v5 = vsel %vm229_vm1, %v55_v1, 0  ;;  %v237_v6 = vsel %vm229_vm1, %v7093_v2, 0  ;;  %v72_v7 = vmul.f32 %v56_v3, %v56_v3  ;;  %v7098_v8 = vld [vmem:[#allocation10] sm:$0xff]  ;;  %v7100_v9 = vld [vmem:[#allocation6 + $0x2] sm:$0x1] }
  0x28   :  { %v7102_v10 = vand.u32 4294901760, %v231_v5  ;;  %v7104_v11 = vand.u32 4294901760, %v237_v6  ;;  %v234_v12 = vsel %vm229_vm1, %v7098_v8, 0  ;;  %v7108_v13 = vld [vmem:[#allocation6 + $0x3] sm:$0x1]  ;;  %v73_v18 = vmul.f32 %v7100_v9, %v7100_v9  ;;  %v7230_v1 = vld [vmem:[#allocation10 + $0x20] sm:$0xff] }
  0x29   :  { %v78_v14 = vsel %vm77_vm2, %v71_v4, 0.0  ;;  %v7111_v15 = vand.u32 4294901760, %v234_v12  ;;  %v81_v19 = vsel %vm77_vm2, %v72_v7, 0.0  ;;  %v74_v21 = vmul.f32 %v7108_v13, %v7108_v13  ;;  %v7125_v22 = vld [vmem:[#allocation6 + $0x4] sm:$0x1]  ;;  %v7150_v42 = vld [vmem:[#allocation10 + $0x10] sm:$0xff] }
  0x2a   :  { %v7114_v16 = vsub.f32 %v231_v5, %v7102_v10  ;;  %79 = vadd.xlane.f32.xlu0 %v78_v14  ;;  %6389 = vmatpush3.xpose.msra.mxu0 %v7104_v11  ;;  %v346_v17 = vsub.f32 %v237_v6, %v7104_v11  ;;  %v84_v24 = vsel %vm77_vm2, %v73_v18, 0.0  ;;  %v7129_v26 = vld [vmem:[#allocation6 + $0x5] sm:$0x1]  ;;  %v75_v31 = vmul.f32 %v7125_v22, %v7125_v22  ;;  %v7206_v59 = vld [vmem:[#allocation10 + $0x28] sm:$0xf] }
  0x2b   :  { %6390 = vmatprep.subr.mxu0 %v7054_v0  ;;  %v353_v20 = vsub.f32 %v234_v12, %v7111_v15  ;;  %85 = vadd.xlane.f32.xlu1 %v84_v24  ;;  %v87_v30 = vsel %vm77_vm2, %v74_v21, 0.0  ;;  %v76_v33 = vmul.f32 %v7129_v26, %v7129_v26  ;;  %v7139_v36 = vld [vmem:[#allocation10 + $0x18] sm:$0xf]  ;;  %v699_v40 = vsel %vm229_vm1, %v56_v3, 0 }
  0x2c   :  { %v347_v23 = vand.u32 4294901760, %v346_v17  ;;  %v308_v25 = vand.u32 4294901760, %v7114_v16  ;;  %v90_v38 = vsel %vm77_vm2, %v75_v31, 0.0  ;;  %v705_v41 = vsel %vm229_vm1, %v7139_v36, 0 }
  0x2d   :  { %v354_v27 = vand.u32 4294901760, %v353_v20  ;;  %v93_v39 = vsel %vm77_vm2, %v76_v33, 0.0  ;;  %v7152_v43 = vand.u32 4294901760, %v699_v40  ;;  %v7154_v44 = vand.u32 4294901760, %v705_v41 }
  0x2e   :  { %82 = vadd.xlane.f32.xlu0 %v81_v19  ;;  %6391 = vmatpush3.xpose.msra.mxu0 %v7111_v15  ;;  %v348_v28 = vsub.f32 %v346_v17, %v347_v23  ;;  %v309_v29 = vsub.f32 %v7114_v16, %v308_v25  ;;  %v702_v45 = vsel %vm229_vm1, %v7150_v42, 0  ;;  %v7056_v55 = vmov 0  }
  0x2f   :  { %6402 = vmatprep.subr.mxu0 %v7054_v0  ;;  %v355_v32 = vsub.f32 %v353_v20, %v354_v27  ;;  %88 = vadd.xlane.f32.xlu1 %v87_v30  ;;  %v7162_v46 = vsub.f32 %v699_v40, %v7152_v43  ;;  %v7167_v47 = vsub.f32 %v705_v41, %v7154_v44  ;;  %v7169_v48 = vand.u32 4294901760, %v702_v45 }
  0x30   :  { %v349_v34 = vand.u32 4294901760, %v348_v28  ;;  %v310_v35 = vand.u32 4294901760, %v309_v29  ;;  %6904 = vset.pattern.permute.xlu1 %v7056_v55  ;;  %6903 = vset.pattern.permute.xlu0 %v7056_v55  ;;  %vm192_vm3 = vcmask 0   ;;  %v7057_v60 = vmov 1.0  }
  0x31   :  { %v356_v37 = vand.u32 4294901760, %v355_v32  ;;  %v7179_v49 = vsub.f32 %v702_v45, %v7169_v48  ;;  %v815_v50 = vand.u32 4294901760, %v7167_v47  ;;  %v776_v51 = vand.u32 4294901760, %v7162_v46  ;;  %211 = vst.msk [vmem:[#allocation3] sm:$0x1] %vm192_vm3, %v7057_v60 }
  0x32   :  { %6396 = vmatpush3.xpose.msra.mxu1 %v349_v34  ;;  %6393 = vmatmul.mubr.f32.vlgmr.msra.gmra.mxu0 %v310_v35  ;;  %212 = vst.msk [vmem:[#allocation3 + $0x1] sm:$0x1] %vm192_vm3, %v7057_v60  ;;  %213 = vst.msk [vmem:[#allocation3 + $0x2] sm:$0x1] %vm192_vm3, %v7057_v60  ;;  %v1167_v62 = vsel %vm229_vm1, %v7100_v9, 0  ;;  %v1173_v63 = vsel %vm229_vm1, %v7206_v59, 0 }
  0x33   :  { %6403 = vmatpush3.xpose.msra.mxu0 %v346_v17  ;;  %6397 = vmatprep.subr.mxu1 %v7054_v0  ;;  %v816_v52 = vsub.f32 %v7167_v47, %v815_v50  ;;  %v777_v53 = vsub.f32 %v7162_v46, %v776_v51  ;;  %v822_v54 = vand.u32 4294901760, %v7179_v49  ;;  %214 = vst.msk [vmem:[#allocation3 + $0x3] sm:$0x1] %vm192_vm3, %v7057_v60  ;;  %215 = vst.msk [vmem:[#allocation3 + $0x4] sm:$0x1] %vm192_vm3, %v7057_v60  ;;  %vm5933_vm4 = vcmask 90112  }
  0x34   :  { %6404 = vmatprep.subr.mxu0 %v7054_v0  ;;  %6406 = vmatprep.mubr.msk.f32.mxu0 %vm7055_vm0, %v7054_v0  ;;  %216 = vst.msk [vmem:[#allocation3 + $0x5] sm:$0x1] %vm192_vm3, %v7057_v60  ;;  %v7234_v3 = vand.u32 4294901760, %v1167_v62  ;;  %v7236_v4 = vand.u32 4294901760, %v1173_v63  ;;  %v1170_v5 = vsel %vm229_vm1, %v7230_v1, 0  ;;  %v2103_v45 = vsel %vm229_vm1, %v7125_v22, 0 }
  0x35   :  { %91 = vadd.xlane.f32.xlu0 %v90_v38  ;;  %94 = vadd.xlane.f32.xlu1 %v93_v39  ;;  %v817_v56 = vand.u32 4294901760, %v816_v52  ;;  %v778_v57 = vand.u32 4294901760, %v777_v53  ;;  %v823_v58 = vsub.f32 %v7179_v49, %v822_v54  ;;  %v7250_v9 = vand.u32 4294901760, %v1170_v5 }
  0x36   :  { %6398 = vmatpush3.xpose.msra.mxu1 %v356_v37  ;;  %v7245_v6 = vsub.f32 %v1167_v62, %v7234_v3  ;;  %v1282_v7 = vsub.f32 %v1173_v63, %v7236_v4 }
  0x37   :  { %6405 = vmatpush3.xpose.msra.mxu0 %v353_v20  ;;  %6409 = vmatprep.subr.mxu1 %v7054_v0  ;;  %v824_v61 = vand.u32 4294901760, %v823_v58  ;;  %v7279_v20 = vld [vmem:[#allocation10 + $0x38] sm:$0xf] }
  0x38   :  { %6416 = vmatprep.subr.mxu0 %v7054_v0  ;;  %v1244_v12 = vand.u32 4294901760, %v7245_v6  ;;  %v1641_v24 = vsel %vm229_vm1, %v7279_v20, 0 }
  0x39   :  { %6400 = vmatmul.mubr.f32.vlgmr.msra.gmra.mxu1 %v7102_v10 }
  0x3a   :  { %6410 = vmatpush3.xpose.msra.mxu1 %v7104_v11  ;;  %6407 = vmatmul.mubr.f32.vlgmr.msra.gmra.mxu0 %v7114_v16 }
  0x3b   :  { %6417 = vmatpush3.xpose.msra.mxu0 %v347_v23  ;;  %6411 = vmatprep.subr.mxu1 %v7054_v0  ;;  %v1635_v23 = vsel %vm229_vm1, %v7108_v13, 0  ;;  %v7296_v13 = vand.u32 4294901760, %v1641_v24 }
  0x3c   :  { %6418 = vmatprep.subr.mxu0 %v7054_v0  ;;  %6413 = vmatprep.mubr.msk.f32.mxu1 %vm7055_vm0, %v7054_v0 }
  0x3d   :  { %6420 = vmatprep.mubr.msk.f32.mxu0 %vm7055_vm0, %v7054_v0  ;;  %v1750_v30 = vsub.f32 %v1641_v24, %v7296_v13 }
  0x3e   :  { %6412 = vmatpush3.xpose.msra.mxu1 %v7111_v15 }
  0x3f   :  { %6419 = vmatpush3.xpose.msra.mxu0 %v354_v27  ;;  %6423 = vmatprep.subr.mxu1 %v7054_v0  ;;  %v7294_v27 = vand.u32 4294901760, %v1635_v23  ;;  %v1751_v33 = vand.u32 4294901760, %v1750_v30 }
  0x40   :  { %6430 = vmatprep.subr.mxu0 %v7054_v0 }
  0x41   :  { %6414 = vmatmul.mubr.f32.vlgmr.msra.gmra.mxu1 %v308_v25  ;;  %v7290_v25 = vld [vmem:[#allocation10 + $0x30] sm:$0xff]  ;;  %v7304_v29 = vsub.f32 %v1635_v23, %v7294_v27  ;;  %v1752_v35 = vsub.f32 %v1750_v30, %v1751_v33 }
  0x42   :  { %6424 = vmatpush3.xpose.msra.mxu1 %v7104_v11  ;;  %6421 = vmatmul.mubr.f32.vlgmr.msra.gmra.mxu0 %v7102_v10  ;;  %v1283_v11 = vand.u32 4294901760, %v1282_v7  ;;  %v1638_v28 = vsel %vm229_vm1, %v7290_v25, 0 }
  0x43   :  { %6431 = vmatpush3.xpose.msra.mxu0 %v7154_v44  ;;  %6425 = vmatprep.subr.mxu1 %v7054_v0  ;;  %v7309_v31 = vand.u32 4294901760, %v1638_v28  ;;  %v1712_v34 = vand.u32 4294901760, %v7304_v29  ;;  %v1753_v39 = vand.u32 4294901760, %v1752_v35 }
  0x44   :  { %6432 = vmatprep.subr.mxu0 %v7054_v0  ;;  %6427 = vmatprep.mubr.msk.f32.mxu1 %vm7055_vm0, %v7054_v0  ;;  %v1284_v14 = vsub.f32 %v1282_v7, %v1283_v11 }
  0x45   :  { %6434 = vmatprep.mubr.msk.f32.mxu0 %vm7055_vm0, %v7054_v0  ;;  %v1757_v32 = vsub.f32 %v1638_v28, %v7309_v31  ;;  %v1713_v37 = vsub.f32 %v7304_v29, %v1712_v34  ;;  %v3039_v28 = vmul.f32 %v7093_v2, %v7093_v2 }
  0x46   :  { %6426 = vmatpush3.xpose.msra.mxu1 %v7111_v15  ;;  %v1245_v15 = vsub.f32 %v7245_v6, %v1244_v12  ;;  %v1285_v17 = vand.u32 4294901760, %v1284_v14 }
  0x47   :  { %6433 = vmatpush3.xpose.msra.mxu0 %v7169_v48  ;;  %6437 = vmatprep.subr.mxu1 %v7054_v0  ;;  %v1758_v38 = vand.u32 4294901760, %v1757_v32  ;;  %v1714_v40 = vand.u32 4294901760, %v1713_v37 }
  0x48   :  { %6444 = vmatprep.subr.mxu0 %v7054_v0  ;;  %v1246_v18 = vand.u32 4294901760, %v1245_v15 }
  0x49   :  { %6428 = vmatmul.mubr.f32.vlgmr.msra.gmra.mxu1 %v7102_v10  ;;  %v1289_v10 = vsub.f32 %v1170_v5, %v7250_v9  ;;  %v1759_v41 = vsub.f32 %v1757_v32, %v1758_v38 }
  0x4a   :  { %6438 = vmatpush3.xpose.msra.mxu1 %v817_v56  ;;  %6435 = vmatmul.mubr.f32.vlgmr.msra.gmra.mxu0 %v778_v57 }
  0x4b   :  { %6445 = vmatpush3.xpose.msra.mxu0 %v7167_v47  ;;  %6439 = vmatprep.subr.mxu1 %v7054_v0  ;;  %v1290_v16 = vand.u32 4294901760, %v1289_v10  ;;  %v7347_v47 = vld [vmem:[#allocation10 + $0x40] sm:$0xff] }
  0x4c   :  { %6446 = vmatprep.subr.mxu0 %v7054_v0  ;;  %6441 = vmatprep.mubr.msk.f32.mxu1 %vm7055_vm0, %v7054_v0 }
  0x4d   :  { %6448 = vmatprep.mubr.msk.f32.mxu0 %vm7055_vm0, %v7054_v0  ;;  %v1291_v19 = vsub.f32 %v1289_v10, %v1290_v16 }
  0x4e   :  { %6440 = vmatpush3.xpose.msra.mxu1 %v824_v61 }
  0x4f   :  { %6447 = vmatpush3.xpose.msra.mxu0 %v7179_v49  ;;  %6451 = vmatprep.subr.mxu1 %v7054_v0  ;;  %v1292_v21 = vand.u32 4294901760, %v1291_v19  ;;  %v2106_v49 = vsel %vm229_vm1, %v7347_v47, 0 }
  0x50   :  { %6458 = vmatprep.subr.mxu0 %v7054_v0  ;;  %v7366_v52 = vand.u32 4294901760, %v2106_v49 }
  0x51   :  { %6442 = vmatmul.mubr.f32.vlgmr.msra.gmra.mxu1 %v7152_v43 }
  0x52   :  { %6452 = vmatpush3.xpose.msra.mxu1 %v7154_v44  ;;  %6449 = vmatmul.mubr.f32.vlgmr.msra.gmra.mxu0 %v7162_v46  ;;  %v2225_v53 = vsub.f32 %v2106_v49, %v7366_v52 }
  0x53   :  { %6459 = vmatpush3.xpose.msra.mxu0 %v815_v50  ;;  %6453 = vmatprep.subr.mxu1 %v7054_v0 }
  0x54   :  { %6460 = vmatprep.subr.mxu0 %v7054_v0  ;;  %6455 = vmatprep.mubr.msk.f32.mxu1 %vm7055_vm0, %v7054_v0  ;;  %v2226_v61 = vand.u32 4294901760, %v2225_v53 }
  0x55   :  { %6462 = vmatprep.mubr.msk.f32.mxu0 %vm7055_vm0, %v7054_v0 }
  0x56   :  { %6454 = vmatpush3.xpose.msra.mxu1 %v7169_v48 }
  0x57   :  { %6461 = vmatpush3.xpose.msra.mxu0 %v822_v54  ;;  %6465 = vmatprep.subr.mxu1 %v7054_v0 }
  0x58   :  { %6472 = vmatprep.subr.mxu0 %v7054_v0 }
  0x59   :  { %6456 = vmatmul.mubr.f32.vlgmr.msra.gmra.mxu1 %v776_v51 }
  0x5a   :  { %6466 = vmatpush3.xpose.msra.mxu1 %v7154_v44  ;;  %6463 = vmatmul.mubr.f32.vlgmr.msra.gmra.mxu0 %v7152_v43  ;;  %v1760_v44 = vand.u32 4294901760, %v1759_v41 }
  0x5b   :  { %6473 = vmatpush3.xpose.msra.mxu0 %v7236_v4  ;;  %6467 = vmatprep.subr.mxu1 %v7054_v0 }
  0x5c   :  { %6474 = vmatprep.subr.mxu0 %v7054_v0  ;;  %6469 = vmatprep.mubr.msk.f32.mxu1 %vm7055_vm0, %v7054_v0 }
  0x5d   :  { %6476 = vmatprep.mubr.msk.f32.mxu0 %vm7055_vm0, %v7054_v0 }
  0x5e   :  { %6468 = vmatpush3.xpose.msra.mxu1 %v7169_v48  ;;  %v7351_v48 = vand.u32 4294901760, %v2103_v45 }
  0x5f   :  { %6475 = vmatpush3.xpose.msra.mxu0 %v7250_v9  ;;  %6479 = vmatprep.subr.mxu1 %v7054_v0 }
  0x60   :  { %6486 = vmatprep.subr.mxu0 %v7054_v0  ;;  %v7361_v50 = vsub.f32 %v2103_v45, %v7351_v48 }
  0x61   :  { %6470 = vmatmul.mubr.f32.vlgmr.msra.gmra.mxu1 %v7152_v43  ;;  %v7336_v43 = vld [vmem:[#allocation10 + $0x48] sm:$0xf] }
  0x62   :  { %6480 = vmatpush3.xpose.msra.mxu1 %v1285_v17  ;;  %6477 = vmatmul.mubr.f32.vlgmr.msra.gmra.mxu0 %v1246_v18  ;;  %v2109_v46 = vsel %vm229_vm1, %v7336_v43, 0  ;;  %v2180_v56 = vand.u32 4294901760, %v7361_v50 }
  0x63   :  { %6487 = vmatpush3.xpose.msra.mxu0 %v1282_v7  ;;  %6481 = vmatprep.subr.mxu1 %v7054_v0  ;;  %v7353_v22 = vand.u32 4294901760, %v2109_v46 }
  0x64   :  { %6488 = vmatprep.subr.mxu0 %v7054_v0  ;;  %6483 = vmatprep.mubr.msk.f32.mxu1 %vm7055_vm0, %v7054_v0  ;;  %v2181_v58 = vsub.f32 %v7361_v50, %v2180_v56 }
  0x65   :  { %6490 = vmatprep.mubr.msk.f32.mxu0 %vm7055_vm0, %v7054_v0  ;;  %v2218_v51 = vsub.f32 %v2109_v46, %v7353_v22 }
  0x66   :  { %6482 = vmatpush3.xpose.msra.mxu1 %v1292_v21  ;;  %v2182_v63 = vand.u32 4294901760, %v2181_v58 }
  0x67   :  { %6489 = vmatpush3.xpose.msra.mxu0 %v1289_v10  ;;  %6493 = vmatprep.subr.mxu1 %v7054_v0  ;;  %v2219_v54 = vand.u32 4294901760, %v2218_v51 }
  0x68   :  { %6500 = vmatprep.subr.mxu0 %v7054_v0 }
  0x69   :  { %6484 = vmatmul.mubr.f32.vlgmr.msra.gmra.mxu1 %v7234_v3  ;;  %v2220_v57 = vsub.f32 %v2218_v51, %v2219_v54 }
  0x6a   :  { %6494 = vmatpush3.xpose.msra.mxu1 %v7236_v4  ;;  %6491 = vmatmul.mubr.f32.vlgmr.msra.gmra.mxu0 %v7245_v6  ;;  %v2571_v6 = vsel %vm229_vm1, %v7129_v26, 0 }
  0x6b   :  { %6501 = vmatpush3.xpose.msra.mxu0 %v1283_v11  ;;  %6495 = vmatprep.subr.mxu1 %v7054_v0  ;;  %v2221_v62 = vand.u32 4294901760, %v2220_v57  ;;  %v7408_v10 = vand.u32 4294901760, %v2571_v6 }
  0x6c   :  { %6502 = vmatprep.subr.mxu0 %v7054_v0  ;;  %6497 = vmatprep.mubr.msk.f32.mxu1 %vm7055_vm0, %v7054_v0 }
  0x6d   :  { %6504 = vmatprep.mubr.msk.f32.mxu0 %vm7055_vm0, %v7054_v0 }
  0x6e   :  { %6496 = vmatpush3.xpose.msra.mxu1 %v7250_v9 }
  0x6f   :  { %6503 = vmatpush3.xpose.msra.mxu0 %v1290_v16  ;;  %6507 = vmatprep.subr.mxu1 %v7054_v0 }
  0x70   :  { %6514 = vmatprep.subr.mxu0 %v7054_v0 }
  0x71   :  { %6498 = vmatmul.mubr.f32.vlgmr.msra.gmra.mxu1 %v1244_v12  ;;  %v7418_v12 = vsub.f32 %v2571_v6, %v7408_v10 }
  0x72   :  { %6508 = vmatpush3.xpose.msra.mxu1 %v7236_v4  ;;  %6505 = vmatmul.mubr.f32.vlgmr.msra.gmra.mxu0 %v7234_v3  ;;  %v7393_v4 = vld [vmem:[#allocation10 + $0x58] sm:$0xf] }
  0x73   :  { %6515 = vmatpush3.xpose.msra.mxu0 %v7296_v13  ;;  %6509 = vmatprep.subr.mxu1 %v7054_v0  ;;  %v2577_v7 = vsel %vm229_vm1, %v7393_v4, 0  ;;  %v2648_v18 = vand.u32 4294901760, %v7418_v12 }
  0x74   :  { %6516 = vmatprep.subr.mxu0 %v7054_v0  ;;  %6511 = vmatprep.mubr.msk.f32.mxu1 %vm7055_vm0, %v7054_v0  ;;  %v7410_v26 = vand.u32 4294901760, %v2577_v7 }
  0x75   :  { %6518 = vmatprep.mubr.msk.f32.mxu0 %vm7055_vm0, %v7054_v0  ;;  %v2649_v21 = vsub.f32 %v7418_v12, %v2648_v18 }
  0x76   :  { %6510 = vmatpush3.xpose.msra.mxu1 %v7250_v9  ;;  %v7404_v9 = vld [vmem:[#allocation10 + $0x50] sm:$0xff]  ;;  %v2686_v14 = vsub.f32 %v2577_v7, %v7410_v26 }
  0x77   :  { %6517 = vmatpush3.xpose.msra.mxu0 %v7309_v31  ;;  %6521 = vmatprep.subr.mxu1 %v7054_v0  ;;  %v2574_v11 = vsel %vm229_vm1, %v7404_v9, 0 }
  0x78   :  { %6528 = vmatprep.subr.mxu0 %v7054_v0  ;;  %v7423_v15 = vand.u32 4294901760, %v2574_v11  ;;  %v2687_v17 = vand.u32 4294901760, %v2686_v14 }
  0x79   :  { %6512 = vmatmul.mubr.f32.vlgmr.msra.gmra.mxu1 %v7234_v3  ;;  %v2227_v3 = vsub.f32 %v2225_v53, %v2226_v61 }
  0x7a   :  { %6522 = vmatpush3.xpose.msra.mxu1 %v1753_v39  ;;  %6519 = vmatmul.mubr.f32.vlgmr.msra.gmra.mxu0 %v1714_v40  ;;  %v7433_v16 = vsub.f32 %v2574_v11, %v7423_v15  ;;  %v2688_v19 = vsub.f32 %v2686_v14, %v2687_v17 }
  0x7b   :  { %6529 = vmatpush3.xpose.msra.mxu0 %v1750_v30  ;;  %6523 = vmatprep.subr.mxu1 %v7054_v0  ;;  %v2228_v5 = vand.u32 4294901760, %v2227_v3  ;;  %v3057_v30 = vsel %vm229_vm1, %v3039_v28, 0 }
  0x7c   :  { %6530 = vmatprep.subr.mxu0 %v7054_v0  ;;  %6525 = vmatprep.mubr.msk.f32.mxu1 %vm7055_vm0, %v7054_v0  ;;  %v2694_v23 = vand.u32 4294901760, %v7433_v16  ;;  %v2689_v24 = vand.u32 4294901760, %v2688_v19  ;;  %v7468_v2 = vand.u32 4294901760, %v3057_v30 }
  0x7d   :  { %6532 = vmatprep.mubr.msk.f32.mxu0 %vm7055_vm0, %v7054_v0 }
  0x7e   :  { %6524 = vmatpush3.xpose.msra.mxu1 %v1760_v44 }
  0x7f   :  { %6531 = vmatpush3.xpose.msra.mxu0 %v1757_v32  ;;  %6535 = vmatprep.subr.mxu1 %v7054_v0 }
  0x80   :  { %6542 = vmatprep.subr.mxu0 %v7054_v0 }
  0x81   :  { %6526 = vmatmul.mubr.f32.vlgmr.msra.gmra.mxu1 %v7294_v27 }
  0x82   :  { %6536 = vmatpush3.xpose.msra.mxu1 %v7296_v13  ;;  %6533 = vmatmul.mubr.f32.vlgmr.msra.gmra.mxu0 %v7304_v29 }
  0x83   :  { %6543 = vmatpush3.xpose.msra.mxu0 %v1751_v33  ;;  %6537 = vmatprep.subr.mxu1 %v7054_v0  ;;  %v7480_v33 = vsub.f32 %v3057_v30, %v7468_v2 }
  0x84   :  { %6544 = vmatprep.subr.mxu0 %v7054_v0  ;;  %6539 = vmatprep.mubr.msk.f32.mxu1 %vm7055_vm0, %v7054_v0 }
  0x85   :  { %6546 = vmatprep.mubr.msk.f32.mxu0 %vm7055_vm0, %v7054_v0  ;;  %v3167_v40 = vand.u32 4294901760, %v7480_v33 }
  0x86   :  { %6538 = vmatpush3.xpose.msra.mxu1 %v7309_v31 }
  0x87   :  { %6545 = vmatpush3.xpose.msra.mxu0 %v1758_v38  ;;  %6549 = vmatprep.subr.mxu1 %v7054_v0 }
  0x88   :  { %6556 = vmatprep.subr.mxu0 %v7054_v0 }
  0x89   :  { %6540 = vmatmul.mubr.f32.vlgmr.msra.gmra.mxu1 %v1712_v34 }
  0x8a   :  { %6550 = vmatpush3.xpose.msra.mxu1 %v7296_v13  ;;  %6547 = vmatmul.mubr.f32.vlgmr.msra.gmra.mxu0 %v7294_v27  ;;  %v2695_v13 = vsub.f32 %v7433_v16, %v2694_v23 }
  0x8b   :  { %6557 = vmatpush3.xpose.msra.mxu0 %v7353_v22  ;;  %6551 = vmatprep.subr.mxu1 %v7054_v0 }
  0x8c   :  { %6558 = vmatprep.subr.mxu0 %v7054_v0  ;;  %6553 = vmatprep.mubr.msk.f32.mxu1 %vm7055_vm0, %v7054_v0  ;;  %v2696_v29 = vand.u32 4294901760, %v2695_v13 }
  0x8d   :  { %6560 = vmatprep.mubr.msk.f32.mxu0 %vm7055_vm0, %v7054_v0 }
  0x8e   :  { %6552 = vmatpush3.xpose.msra.mxu1 %v7309_v31  ;;  %v3038_v31 = vmul.f32 %v7098_v8, %v7098_v8  ;;  %v3051_v8 = vsel %vm229_vm1, 1.0, %v7056_v55 }
  0x8f   :  { %6559 = vmatpush3.xpose.msra.mxu0 %v7366_v52  ;;  %6563 = vmatprep.subr.mxu1 %v7054_v0  ;;  %v7484_v35 = vsub.f32 %v3051_v8, %v3051_v8 }
  0x90   :  { %6570 = vmatprep.subr.mxu0 %v7054_v0  ;;  %v3054_v32 = vsel %vm229_vm1, %v3038_v31, 0 }
  0x91   :  { %6554 = vmatmul.mubr.f32.vlgmr.msra.gmra.mxu1 %v7294_v27  ;;  %v2650_v27 = vand.u32 4294901760, %v2649_v21  ;;  %v7482_v34 = vand.u32 4294901760, %v3054_v32  ;;  %v7498_v41 = vand.u32 4294901760, %v7484_v35 }
  0x92   :  { %6564 = vmatpush3.xpose.msra.mxu1 %v2221_v62  ;;  %6561 = vmatmul.mubr.f32.vlgmr.msra.gmra.mxu0 %v2182_v63  ;;  %v3041_v62 = vmul.f32 %v7139_v36, %v7139_v36  ;;  %v3040_v36 = vmul.f32 %v7150_v42, %v7150_v42 }
  0x93   :  { %6571 = vmatpush3.xpose.msra.mxu0 %v2218_v51  ;;  %6565 = vmatprep.subr.mxu1 %v7054_v0  ;;  %v7494_v39 = vsub.f32 %v3054_v32, %v7482_v34  ;;  %v3129_v49 = vsub.f32 %v7484_v35, %v7498_v41 }
  0x94   :  { %6572 = vmatprep.subr.mxu0 %v7054_v0  ;;  %6567 = vmatprep.mubr.msk.f32.mxu1 %vm7055_vm0, %v7054_v0  ;;  %v3519_v11 = vsel %vm229_vm1, %v3040_v36, 0  ;;  %v3044_v36 = vmul.f32 %v7290_v25, %v7290_v25 }
  0x95   :  { %6574 = vmatprep.mubr.msk.f32.mxu0 %vm7055_vm0, %v7054_v0 }
  0x96   :  { %6566 = vmatpush3.xpose.msra.mxu1 %v2228_v5  ;;  %v3522_v5 = vsel %vm229_vm1, %v3041_v62, 0 }
  0x97   :  { %6573 = vmatpush3.xpose.msra.mxu0 %v2225_v53  ;;  %6577 = vmatprep.subr.mxu1 %v7054_v0 }
  0x98   :  { %6584 = vmatprep.subr.mxu0 %v7054_v0 }
  0x99   :  { %6568 = vmatmul.mubr.f32.vlgmr.msra.gmra.mxu1 %v7351_v48 }
  0x9a   :  { %6578 = vmatpush3.xpose.msra.mxu1 %v7353_v22  ;;  %6575 = vmatmul.mubr.f32.vlgmr.msra.gmra.mxu0 %v7361_v50  ;;  %v3174_v50 = vand.u32 4294901760, %v7494_v39 }
  0x9b   :  { %6585 = vmatpush3.xpose.msra.mxu0 %v2219_v54  ;;  %6579 = vmatprep.subr.mxu1 %v7054_v0  ;;  %v7520_v54 = vand.u32 4294901760, %v3129_v49 }
  0x9c   :  { %6586 = vmatprep.subr.mxu0 %v7054_v0  ;;  %6581 = vmatprep.mubr.msk.f32.mxu1 %vm7055_vm0, %v7054_v0 }
  0x9d   :  { %6588 = vmatprep.mubr.msk.f32.mxu0 %vm7055_vm0, %v7054_v0 }
  0x9e   :  { %6580 = vmatpush3.xpose.msra.mxu1 %v7366_v52 }
  0x9f   :  { %6587 = vmatpush3.xpose.msra.mxu0 %v2226_v61  ;;  %6591 = vmatprep.subr.mxu1 %v7054_v0 }
  0xa0   :  { %6598 = vmatprep.subr.mxu0 %v7054_v0 }
  0xa1   :  { %6582 = vmatmul.mubr.f32.vlgmr.msra.gmra.mxu1 %v2180_v56  ;;  %v3175_v56 = vsub.f32 %v7494_v39, %v3174_v50 }
  0xa2   :  { %6592 = vmatpush3.xpose.msra.mxu1 %v7353_v22  ;;  %6589 = vmatmul.mubr.f32.vlgmr.msra.gmra.mxu0 %v7351_v48  ;;  %v3168_v22 = vsub.f32 %v7480_v33, %v3167_v40 }
  0xa3   :  { %6599 = vmatpush3.xpose.msra.mxu0 %v7410_v26  ;;  %6593 = vmatprep.subr.mxu1 %v7054_v0  ;;  %v3176_v63 = vand.u32 4294901760, %v3175_v56 }
  0xa4   :  { %6600 = vmatprep.subr.mxu0 %v7054_v0  ;;  %6595 = vmatprep.mubr.msk.f32.mxu1 %vm7055_vm0, %v7054_v0 }
  0xa5   :  { %6602 = vmatprep.mubr.msk.f32.mxu0 %vm7055_vm0, %v7054_v0 }
  0xa6   :  { %6594 = vmatpush3.xpose.msra.mxu1 %v7366_v52  ;;  %v3169_v52 = vand.u32 4294901760, %v3168_v22 }
  0xa7   :  { %6601 = vmatpush3.xpose.msra.mxu0 %v7423_v15  ;;  %6605 = vmatprep.subr.mxu1 %v7054_v0 }
  0xa8   :  { %6612 = vmatprep.subr.mxu0 %v7054_v0 }
  0xa9   :  { %6596 = vmatmul.mubr.f32.vlgmr.msra.gmra.mxu1 %v7351_v48 }
  0xaa   :  { %6606 = vmatpush3.xpose.msra.mxu1 %v2689_v24  ;;  %6603 = vmatmul.mubr.f32.vlgmr.msra.gmra.mxu0 %v2650_v27 }
  0xab   :  { %6613 = vmatpush3.xpose.msra.mxu0 %v2686_v14  ;;  %6607 = vmatprep.subr.mxu1 %v7054_v0 }
  0xac   :  { %6614 = vmatprep.subr.mxu0 %v7054_v0  ;;  %6609 = vmatprep.mubr.msk.f32.mxu1 %vm7055_vm0, %v7054_v0 }
  0xad   :  { %6616 = vmatprep.mubr.msk.f32.mxu0 %vm7055_vm0, %v7054_v0 }
  0xae   :  { %6608 = vmatpush3.xpose.msra.mxu1 %v2696_v29 }
  0xaf   :  { %6615 = vmatpush3.xpose.msra.mxu0 %v7433_v16  ;;  %6619 = vmatprep.subr.mxu1 %v7054_v0  ;;  %v7569_v16 = vand.u32 4294901760, %v3519_v11 }
  0xb0   :  { %6626 = vmatprep.subr.mxu0 %v7054_v0 }
  0xb1   :  { %6610 = vmatmul.mubr.f32.vlgmr.msra.gmra.mxu1 %v7408_v10  ;;  %v7585_v21 = vsub.f32 %v3519_v11, %v7569_v16 }
  0xb2   :  { %6620 = vmatpush3.xpose.msra.mxu1 %v7410_v26  ;;  %6617 = vmatmul.mubr.f32.vlgmr.msra.gmra.mxu0 %v7418_v12 }
  0xb3   :  { %v80_v37 = vpop.xlane.xlu0 %79  ;;  %6627 = vmatpush3.xpose.msra.mxu0 %v2687_v17  ;;  %6621 = vmatprep.subr.mxu1 %v7054_v0  ;;  %v3639_v30 = vand.u32 4294901760, %v7585_v21 }
  0xb4   :  { %v96_v55 = vmax.f32 %v80_v37, 1e-24  ;;  %6628 = vmatprep.subr.mxu0 %v7054_v0  ;;  %6623 = vmatprep.mubr.msk.f32.mxu1 %vm7055_vm0, %v7054_v0  ;;  %v86_v38 = vpop.xlane.xlu1 %85 }
  0xb5   :  { %6630 = vmatprep.mubr.msk.f32.mxu0 %vm7055_vm0, %v7054_v0  ;;  %v98_v45 = vmax.f32 %v86_v38, 1e-24  ;;  %v3640_v32 = vsub.f32 %v7585_v21, %v3639_v30 }
  0xb6   :  { %6905 = vrsqrt.f32 %v96_v55  ;;  %6622 = vmatpush3.xpose.msra.mxu1 %v7423_v15 }
  0xb7   :  { %v83_v44 = vpop.xlane.xlu0 %82  ;;  %6629 = vmatpush3.xpose.msra.mxu0 %v2694_v23  ;;  %6633 = vmatprep.subr.mxu1 %v7054_v0  ;;  %6907 = vrsqrt.f32 %v98_v45  ;;  %v7647_v45 = vld [vmem:[#allocation8 + $0x1] sm:$0x1] }
  0xb8   :  { %v97_v46 = vmax.f32 %v83_v44, 1e-24  ;;  %6640 = vmatprep.subr.mxu0 %v7054_v0  ;;  %v89_v48 = vpop.xlane.xlu1 %88  ;;  %v109_v22 = vmul.f32 %v7647_v45, %v7647_v45 }
  0xb9   :  { %6624 = vmatmul.mubr.f32.vlgmr.msra.gmra.mxu1 %v2648_v18  ;;  %v99_v51 = vmax.f32 %v89_v48, 1e-24 }
  0xba   :  { %6909 = vrsqrt.f32 %v97_v46  ;;  %6634 = vmatpush3.xpose.msra.mxu1 %v7410_v26  ;;  %6631 = vmatmul.mubr.f32.vlgmr.msra.gmra.mxu0 %v7408_v10 }
  0xbb   :  { %6641 = vmatpush3.xpose.msra.mxu0 %v7468_v2  ;;  %6635 = vmatprep.subr.mxu1 %v7054_v0  ;;  %6911 = vrsqrt.f32 %v99_v51  ;;  %v117_v51 = vsel %vm77_vm2, %v109_v22, 0.0 }
  0xbc   :  { %6642 = vmatprep.subr.mxu0 %v7054_v0  ;;  %6637 = vmatprep.mubr.msk.f32.mxu1 %vm7055_vm0, %v7054_v0 }
  0xbd   :  { %6644 = vmatprep.mubr.msk.f32.mxu0 %vm7055_vm0, %v7054_v0 }
  0xbe   :  { %6636 = vmatpush3.xpose.msra.mxu1 %v7423_v15  ;;  %v92_v53 = vpop.xlane.xlu0 %91  ;;  %v95_v57 = vpop.xlane.xlu1 %94 }
  0xbf   :  { %6643 = vmatpush3.xpose.msra.mxu0 %v7482_v34  ;;  %6647 = vmatprep.subr.mxu1 %v7054_v0  ;;  %v100_v58 = vmax.f32 %v92_v53, 1e-24  ;;  %v101_v61 = vmax.f32 %v95_v57, 1e-24 }
  0xc0   :  { %6654 = vmatprep.subr.mxu0 %v7054_v0 }
  0xc1   :  { %6638 = vmatmul.mubr.f32.vlgmr.msra.gmra.mxu1 %v7408_v10  ;;  %6913 = vrsqrt.f32 %v100_v58  ;;  %v7548_v10 = vand.u32 4294901760, %v3522_v5  ;;  %v3045_v58 = vmul.f32 %v7279_v20, %v7279_v20 }
  0xc2   :  { %6648 = vmatpush3.xpose.msra.mxu1 %v3169_v52  ;;  %6645 = vmatmul.mubr.f32.vlgmr.msra.gmra.mxu0 %v7520_v54  ;;  %6915 = vrsqrt.f32 %v101_v61  ;;  %v7675_v52 = vld [vmem:[#allocation8 + $0x4] sm:$0x1] }
  0xc3   :  { %v7532_v3 = vpop.eup %6905  ;;  %6655 = vmatpush3.xpose.msra.mxu0 %v7480_v33  ;;  %6649 = vmatprep.subr.mxu1 %v7054_v0  ;;  %v7567_v15 = vsub.f32 %v3522_v5, %v7548_v10  ;;  %v3043_v33 = vmul.f32 %v7206_v59, %v7206_v59  ;;  %v3042_v59 = vmul.f32 %v7230_v1, %v7230_v1  ;;  %v65_v5 = vld [vmem:[#allocation8] sm:$0x1]  ;;  %v4452_v20 = vsel %vm229_vm1, %v3045_v58, 0  ;;  %v70_v58 = vld [vmem:[#allocation8 + $0x5] sm:$0x1] }
  0xc4   :  { %v186_v6 = vmul.f32 14.285714, %v7532_v3  ;;  %6656 = vmatprep.subr.mxu0 %v7054_v0  ;;  %6651 = vmatprep.mubr.msk.f32.mxu1 %vm7055_vm0, %v7054_v0  ;;  %v7545_v7 = vpop.eup %6907  ;;  %v112_v57 = vmul.f32 %v7675_v52, %v7675_v52  ;;  %v7706_v11 = vand.u32 4294901760, %v4452_v20 }
  0xc5   :  { %6658 = vmatprep.mubr.msk.f32.mxu0 %vm7055_vm0, %v7054_v0  ;;  %v188_v42 = vmul.f32 14.285714, %v7545_v7  ;;  %v3632_v23 = vand.u32 4294901760, %v7567_v15  ;;  %v3987_v55 = vsel %vm229_vm1, %v3043_v33, 0 }
  0xc6   :  { %193 = vst.msk [vmem:[#allocation5] sm:$0x1] %vm192_vm3, %v186_v6  ;;  %6650 = vmatpush3.xpose.msra.mxu1 %v3176_v63  ;;  %v7631_v38 = vand.u32 4294901760, %v3987_v55  ;;  %v126_v63 = vsel %vm77_vm2, %v112_v57, 0.0  ;;  %v3047_v57 = vmul.f32 %v7336_v43, %v7336_v43 }
  0xc7   :  { %v7550_v26 = vpop.eup %6909  ;;  %6657 = vmatpush3.xpose.msra.mxu0 %v7494_v39  ;;  %6661 = vmatprep.subr.mxu1 %v7054_v0  ;;  %195 = vst.msk [vmem:[#allocation5 + $0x2] sm:$0x1] %vm192_vm3, %v188_v42  ;;  %v3633_v29 = vsub.f32 %v7567_v15, %v3632_v23 }
  0xc8   :  { %v187_v12 = vmul.f32 14.285714, %v7550_v26  ;;  %6668 = vmatprep.subr.mxu0 %v7054_v0  ;;  %v7561_v14 = vpop.eup %6911  ;;  %v7641_v1 = vsub.f32 %v3987_v55, %v7631_v38 }
  0xc9   :  { %6652 = vmatmul.mubr.msk.f32.vlgmr.msra.gmra.mxu1 %vm229_vm1, %v7057_v60  ;;  %v189_v17 = vmul.f32 14.285714, %v7561_v14 }
  0xca   :  { %194 = vst.msk [vmem:[#allocation5 + $0x1] sm:$0x1] %vm192_vm3, %v187_v12  ;;  %6662 = vmatpush3.xpose.msra.mxu1 %v7468_v2  ;;  %6659 = vmatmul.mubr.f32.vlgmr.msra.gmra.mxu0 %v7484_v35  ;;  %v4097_v48 = vand.u32 4294901760, %v7641_v1  ;;  %v67_v12 = vld [vmem:[#allocation8 + $0x2] sm:$0x1] }
  0xcb   :  { %6669 = vmatpush3.xpose.msra.mxu0 %v3167_v40  ;;  %6663 = vmatprep.subr.mxu1 %v7054_v0  ;;  %196 = vst.msk [vmem:[#allocation5 + $0x3] sm:$0x1] %vm192_vm3, %v189_v17  ;;  %v3984_v40 = vsel %vm229_vm1, %v3042_v59, 0  ;;  %v6978_v17 = vld [vmem:[#allocation6 + $0x2] sm:$0x1] }
  0xcc   :  { %6670 = vmatprep.subr.mxu0 %v7054_v0  ;;  %6665 = vmatprep.mubr.msk.f32.mxu1 %vm7055_vm0, %v7054_v0  ;;  %v7643_v44 = vand.u32 4294901760, %v3984_v40  ;;  %v4098_v49 = vsub.f32 %v7641_v1, %v4097_v48 }
  0xcd   :  { %6672 = vmatprep.mubr.msk.f32.mxu0 %vm7055_vm0, %v7054_v0  ;;  %v5861_v18 = vld [vmem:[#allocation5] sm:$0x1] }
  0xce   :  { %v7581_v19 = vpop.eup %6913  ;;  %6664 = vmatpush3.xpose.msra.mxu1 %v7482_v34  ;;  %5869 = vperm.xlu0 %6903, %v5861_v18   ;;  %v5863_v31 = vld [vmem:[#allocation5 + $0x2] sm:$0x1]  ;;  %v7656_v46 = vsub.f32 %v3984_v40, %v7643_v44  ;;  %v4099_v53 = vand.u32 4294901760, %v4098_v49  ;;  %v146_v18 = vmul.f32 %v6978_v17, %v67_v12 }
  0xcf   :  { %v7588_v24 = vpop.eup %6915  ;;  %v190_v27 = vmul.f32 14.285714, %v7581_v19  ;;  %6671 = vmatpush3.xpose.msra.mxu0 %v3174_v50  ;;  %6675 = vmatprep.subr.mxu1 %v7054_v0 }
  0xd0   :  { %v191_v13 = vmul.f32 14.285714, %v7588_v24  ;;  %6682 = vmatprep.subr.mxu0 %v7054_v0  ;;  %v4104_v50 = vand.u32 4294901760, %v7656_v46 }
  0xd1   :  { %197 = vst.msk [vmem:[#allocation5 + $0x4] sm:$0x1] %vm192_vm3, %v190_v27  ;;  %6666 = vmatmul.mubr.f32.vlgmr.msra.gmra.mxu1 %v7498_v41  ;;  %v5862_v28 = vld [vmem:[#allocation5 + $0x1] sm:$0x1]  ;;  %v7719_v27 = vsub.f32 %v4452_v20, %v7706_v11  ;;  %v113_v20 = vmul.f32 %v70_v58, %v70_v58 }
  0xd2   :  { %198 = vst.msk [vmem:[#allocation5 + $0x5] sm:$0x1] %vm192_vm3, %v191_v13  ;;  %6676 = vmatpush3.xpose.msra.mxu1 %v7468_v2  ;;  %5878 = vperm.xlu1 %6904, %v5862_v28   ;;  %v3634_v2 = vand.u32 4294901760, %v3633_v29  ;;  %v5864_v8 = vld [vmem:[#allocation5 + $0x3] sm:$0x1]  ;;  %v4105_v56 = vsub.f32 %v7656_v46, %v4104_v50 }
  0xd3   :  { %6673 = vmatmul.mubr.msk.f32.vlgmr.msra.gmra.mxu0 %vm229_vm1, %v7057_v60  ;;  %6677 = vmatprep.subr.mxu1 %v7054_v0 }
  0xd4   :  { %6683 = vmatpush3.xpose.msra.mxu0 %v7548_v10  ;;  %6679 = vmatprep.mubr.msk.f32.mxu1 %vm7055_vm0, %v7054_v0  ;;  %v4106_v62 = vand.u32 4294901760, %v4105_v56 }
  0xd5   :  { %6684 = vmatprep.subr.mxu0 %v7054_v0  ;;  %6686 = vmatprep.mubr.msk.f32.mxu0 %vm7055_vm0, %v7054_v0 }
  0xd6   :  { %6678 = vmatpush3.xpose.msra.mxu1 %v7482_v34  ;;  %5887 = vperm.xlu1 %6904, %v5863_v31   ;;  %v3641_v34 = vand.u32 4294901760, %v3640_v32  ;;  %v156_v31 = vsel %vm77_vm2, %v146_v18, 0.0  ;;  %v4562_v32 = vand.u32 4294901760, %v7719_v27 }
  0xd7   :  { %6689 = vmatprep.subr.mxu1 %v7054_v0 }
  0xd8   :  { %6685 = vmatpush3.xpose.msra.mxu0 %v7569_v16  ;;  %v5865_v37 = vld [vmem:[#allocation5 + $0x4] sm:$0x1] }
  0xd9   :  { %6680 = vmatmul.mubr.msk.f32.vlgmr.msra.gmra.mxu1 %vm229_vm1, %v7057_v60  ;;  %6696 = vmatprep.subr.mxu0 %v7054_v0  ;;  %v5866_v39 = vld [vmem:[#allocation5 + $0x5] sm:$0x1] }
  0xda   :  { %6690 = vmatpush3.xpose.msra.mxu1 %v3634_v2  ;;  %5896 = vperm.xlu1 %6904, %v5864_v8   ;;  %v6979_v8 = vld [vmem:[#allocation6 + $0x4] sm:$0x1] }
  0xdb   :  { %6687 = vmatmul.mubr.f32.vlgmr.msra.gmra.mxu0 %v7520_v54  ;;  %6691 = vmatprep.subr.mxu1 %v7054_v0  ;;  %v148_v33 = vmul.f32 %v6979_v8, %v7675_v52 }
  0xdc   :  { %6697 = vmatpush3.xpose.msra.mxu0 %v7567_v15  ;;  %6693 = vmatprep.mubr.msk.f32.mxu1 %vm7055_vm0, %v7054_v0  ;;  %v4449_v15 = vsel %vm229_vm1, %v3044_v36, 0  ;;  %v4917_v36 = vsel %vm229_vm1, %v3047_v57, 0 }
  0xdd   :  { %6698 = vmatprep.subr.mxu0 %v7054_v0  ;;  %6700 = vmatprep.mubr.msk.f32.mxu0 %vm7055_vm0, %v7054_v0  ;;  %v7721_v13 = vand.u32 4294901760, %v4449_v15 }
  0xde   :  { %6692 = vmatpush3.xpose.msra.mxu1 %v3641_v34  ;;  %5905 = vperm.xlu1 %6904, %v5865_v37   ;;  %v108_v34 = vmul.f32 %v65_v5, %v65_v5 }
  0xdf   :  { %6703 = vmatprep.subr.mxu1 %v7054_v0  ;;  %v7733_v2 = vsub.f32 %v4449_v15, %v7721_v13 }
  0xe0   :  { %6699 = vmatpush3.xpose.msra.mxu0 %v7585_v21 }
  0xe1   :  { %6694 = vmatmul.mubr.msk.f32.vlgmr.msra.gmra.mxu1 %vm229_vm1, %v7057_v60  ;;  %6710 = vmatprep.subr.mxu0 %v7054_v0  ;;  %v4569_v40 = vand.u32 4294901760, %v7733_v2 }
  0xe2   :  { %6704 = vmatpush3.xpose.msra.mxu1 %v7548_v10  ;;  %5914 = vperm.xlu1 %6904, %v5866_v39   ;;  %v4563_v39 = vsub.f32 %v7719_v27, %v4562_v32 }
  0xe3   :  { %6701 = vmatmul.mubr.f32.vlgmr.msra.gmra.mxu0 %v7484_v35  ;;  %6705 = vmatprep.subr.mxu1 %v7054_v0  ;;  %v4570_v52 = vsub.f32 %v7733_v2, %v4569_v40 }
  0xe4   :  { %6711 = vmatpush3.xpose.msra.mxu0 %v3632_v23  ;;  %6707 = vmatprep.mubr.msk.f32.mxu1 %vm7055_vm0, %v7054_v0 }
  0xe5   :  { %6712 = vmatprep.subr.mxu0 %v7054_v0  ;;  %6714 = vmatprep.mubr.msk.f32.mxu0 %vm7055_vm0, %v7054_v0 }
  0xe6   :  { %6706 = vmatpush3.xpose.msra.mxu1 %v7569_v16 }
  0xe7   :  { %6717 = vmatprep.subr.mxu1 %v7054_v0 }
  0xe8   :  { %6713 = vmatpush3.xpose.msra.mxu0 %v3639_v30 }
  0xe9   :  { %6708 = vmatmul.mubr.f32.vlgmr.msra.gmra.mxu1 %v7498_v41  ;;  %6724 = vmatprep.subr.mxu0 %v7054_v0 }
  0xea   :  { %6718 = vmatpush3.xpose.msra.mxu1 %v7548_v10  ;;  %6721 = vmatprep.mubr.msk.f32.mxu1 %vm7055_vm0, %v7054_v0  ;;  %v6977_v10 = vld [vmem:[#allocation6] sm:$0x1] }
  0xeb   :  { %6715 = vmatmul.mubr.msk.f32.vlgmr.msra.gmra.mxu0 %vm229_vm1, %v7057_v60  ;;  %6719 = vmatprep.subr.mxu1 %v7054_v0  ;;  %v144_v42 = vmul.f32 %v6977_v10, %v65_v5 }
  0xec   :  { %6725 = vmatpush3.xpose.msra.mxu0 %v7631_v38  ;;  %6728 = vmatprep.mubr.msk.f32.mxu0 %vm7055_vm0, %v7054_v0 }
  0xed   :  { %6726 = vmatprep.subr.mxu0 %v7054_v0  ;;  %118 = vadd.xlane.f32.xlu0 %v117_v51  ;;  %v4564_v51 = vand.u32 4294901760, %v4563_v39 }
  0xee   :  { %6720 = vmatpush3.xpose.msra.mxu1 %v7569_v16  ;;  %v150_v16 = vsel %vm77_vm2, %v144_v42, 0.0  ;;  %v7784_v42 = vand.u32 4294901760, %v4917_v36 }
  0xef   :  { %6731 = vmatprep.subr.mxu1 %v7054_v0 }
  0xf0   :  { %6727 = vmatpush3.xpose.msra.mxu0 %v7643_v44 }
  0xf1   :  { %6722 = vmatmul.mubr.msk.f32.vlgmr.msra.gmra.mxu1 %vm229_vm1, %v7057_v60  ;;  %6738 = vmatprep.subr.mxu0 %v7054_v0 }
  0xf2   :  { %6732 = vmatpush3.xpose.msra.mxu1 %v4099_v53  ;;  %v312_v61 = vpop.f32.mrf.mxu0  ;;  %6735 = vmatprep.mubr.msk.f32.mxu1 %vm7055_vm0, %v7054_v0 }
  0xf3   :  { %6729 = vmatmul.mubr.f32.vlgmr.msra.gmra.mxu0 %v7520_v54  ;;  %6733 = vmatprep.subr.mxu1 %v7054_v0 }
  0xf4   :  { %6739 = vmatpush3.xpose.msra.mxu0 %v7641_v1  ;;  %v6394_v6 = vpop.f32.mrf.mxu0  ;;  %6742 = vmatprep.mubr.msk.f32.mxu0 %vm7055_vm0, %v7054_v0  ;;  %v162_v1 = vsel %vm77_vm2, %v148_v33, 0.0 }
  0xf5   :  { %6740 = vmatprep.subr.mxu0 %v7054_v0  ;;  %127 = vadd.xlane.f32.xlu0 %v126_v63  ;;  %v4571_v63 = vand.u32 4294901760, %v4570_v52  ;;  %v3046_v6 = vmul.f32 %v7347_v47, %v7347_v47  ;;  %v6980_v47 = vld [vmem:[#allocation6 + $0x1] sm:$0x1] }
  0xf6   :  { %6734 = vmatpush3.xpose.msra.mxu1 %v4106_v62  ;;  %v145_v15 = vmul.f32 %v6980_v47, %v7647_v45 }
  0xf7   :  { %6745 = vmatprep.subr.mxu1 %v7054_v0 }
  0xf8   :  { %6741 = vmatpush3.xpose.msra.mxu0 %v7656_v46 }
  0xf9   :  { %v393_v25 = vpop.f32.mrf.mxu1  ;;  %6736 = vmatmul.mubr.msk.f32.vlgmr.msra.gmra.mxu1 %vm229_vm1, %v7057_v60  ;;  %6752 = vmatprep.subr.mxu0 %v7054_v0 }
  0xfa   :  { %v394_v21 = vadd.f32 %v393_v25, %v312_v61  ;;  %6746 = vmatpush3.xpose.msra.mxu1 %v7631_v38  ;;  %v469_v23 = vpop.f32.mrf.mxu0  ;;  %6749 = vmatprep.mubr.msk.f32.mxu1 %vm7055_vm0, %v7054_v0  ;;  %v4914_v25 = vsel %vm229_vm1, %v3046_v6, 0 }
  0xfb   :  { %v6401_v28 = vpop.f32.mrf.mxu1  ;;  %6743 = vmatmul.mubr.f32.vlgmr.msra.gmra.mxu0 %v7484_v35  ;;  %6747 = vmatprep.subr.mxu1 %v7054_v0 }
  0xfc   :  { %v470_v29 = vadd.f32 %v469_v23, %v394_v21  ;;  %6753 = vmatpush3.xpose.msra.mxu0 %v4097_v48  ;;  %v6408_v30 = vpop.f32.mrf.mxu0  ;;  %151 = vadd.xlane.f32.xlu0 %v150_v16  ;;  %v110_v48 = vmul.f32 %v67_v12, %v67_v12  ;;  %v129_v12 = vsel %vm77_vm2, %v113_v20, 0.0  ;;  %v7796_v21 = vsub.f32 %v4917_v36, %v7784_v42 }
  0xfd   :  { %6754 = vmatprep.subr.mxu0 %v7054_v0  ;;  %6756 = vmatprep.mubr.msk.f32.mxu0 %vm7055_vm0, %v7054_v0  ;;  %v7798_v23 = vand.u32 4294901760, %v4914_v25  ;;  %v153_v28 = vsel %vm77_vm2, %v145_v15, 0.0 }
  0xfe   :  { %6748 = vmatpush3.xpose.msra.mxu1 %v7643_v44  ;;  %v120_v53 = vsel %vm77_vm2, %v110_v48, 0.0 }
  0xff   :  { %6759 = vmatprep.subr.mxu1 %v7054_v0  ;;  %v7812_v33 = vsub.f32 %v4914_v25, %v7798_v23 }
 0x100   :  { %6755 = vmatpush3.xpose.msra.mxu0 %v4104_v50  ;;  %157 = vadd.xlane.f32.xlu0 %v156_v31  ;;  %v68_v50 = vld [vmem:[#allocation8 + $0x3] sm:$0x1] }
 0x101   :  { %v544_v37 = vpop.f32.mrf.mxu1  ;;  %6750 = vmatmul.mubr.f32.vlgmr.msra.gmra.mxu1 %v7498_v41  ;;  %6766 = vmatprep.subr.mxu0 %v7054_v0  ;;  %v111_v56 = vmul.f32 %v68_v50, %v68_v50 }
 0x102   :  { %v545_v55 = vadd.f32 %v544_v37, %v470_v29  ;;  %6760 = vmatpush3.xpose.msra.mxu1 %v7631_v38  ;;  %v621_v59 = vpop.f32.mrf.mxu0  ;;  %6763 = vmatprep.mubr.msk.f32.mxu1 %vm7055_vm0, %v7054_v0  ;;  %v114_v38 = vsel %vm77_vm2, %v108_v34, 0.0  ;;  %v6981_v29 = vld [vmem:[#allocation6 + $0x3] sm:$0x1]  ;;  %v5027_v34 = vand.u32 4294901760, %v7796_v21 }
 0x103   :  { %v6415_v46 = vpop.f32.mrf.mxu1  ;;  %6757 = vmatmul.mubr.msk.f32.vlgmr.msra.gmra.mxu0 %vm229_vm1, %v7057_v60  ;;  %6761 = vmatprep.subr.mxu1 %v7054_v0  ;;  %v123_v43 = vsel %vm77_vm2, %v111_v56, 0.0  ;;  %v147_v30 = vmul.f32 %v6981_v29, %v68_v50  ;;  %v3048_v56 = vmul.f32 %v7404_v9, %v7404_v9 }
 0x104   :  { %v622_v22 = vadd.f32 %v621_v59, %v545_v55  ;;  %6767 = vmatpush3.xpose.msra.mxu0 %v7706_v11  ;;  %v6422_v49 = vpop.f32.mrf.mxu0  ;;  %6770 = vmatprep.mubr.msk.f32.mxu0 %vm7055_vm0, %v7054_v0  ;;  %v5034_v46 = vand.u32 4294901760, %v7812_v33 }
 0x105   :  { %6768 = vmatprep.subr.mxu0 %v7054_v0  ;;  %163 = vadd.xlane.f32.xlu0 %v162_v1  ;;  %v5028_v1 = vsub.f32 %v7796_v21, %v5027_v34  ;;  %v3049_v49 = vmul.f32 %v7393_v4, %v7393_v4 }
 0x106   :  { %6762 = vmatpush3.xpose.msra.mxu1 %v7643_v44  ;;  %115 = vadd.xlane.f32.xlu1 %v114_v38 }
 0x107   :  { %6773 = vmatprep.subr.mxu1 %v7054_v0  ;;  %v5029_v48 = vand.u32 4294901760, %v5028_v1  ;;  %v5382_v4 = vsel %vm229_vm1, %v3049_v49, 0 }
 0x108   :  { %6769 = vmatpush3.xpose.msra.mxu0 %v7721_v13 }
 0x109   :  { %v694_v61 = vpop.f32.mrf.mxu1  ;;  %6764 = vmatmul.mubr.msk.f32.vlgmr.msra.gmra.mxu1 %vm229_vm1, %v7057_v60  ;;  %6780 = vmatprep.subr.mxu0 %v7054_v0 }
 0x10a   :  { %v7770_v44 = vadd.f32 %v694_v61, %v622_v22  ;;  %6774 = vmatpush3.xpose.msra.mxu1 %v4564_v51  ;;  %121 = vadd.xlane.f32.xlu1 %v120_v53  ;;  %v780_v62 = vpop.f32.mrf.mxu0  ;;  %v5035_v22 = vsub.f32 %v7812_v33, %v5034_v46  ;;  %v5379_v61 = vsel %vm229_vm1, %v3048_v56, 0 }
 0x10b   :  { %v6429_v5 = vpop.f32.mrf.mxu1  ;;  %6771 = vmatmul.mubr.f32.vlgmr.msra.gmra.mxu0 %v7520_v54  ;;  %6775 = vmatprep.subr.mxu1 %v7054_v0 }
 0x10c   :  { %6781 = vmatpush3.xpose.msra.mxu0 %v7719_v27  ;;  %v6436_v10 = vpop.f32.mrf.mxu0  ;;  %6777 = vmatprep.mubr.msk.f32.mxu1 %vm7055_vm0, %v7054_v0  ;;  %v159_v27 = vsel %vm77_vm2, %v147_v30, 0.0  ;;  %v5036_v52 = vand.u32 4294901760, %v5035_v22 }
 0x10d   :  { %6782 = vmatprep.subr.mxu0 %v7054_v0  ;;  %6784 = vmatprep.mubr.msk.f32.mxu0 %vm7055_vm0, %v7054_v0 }
 0x10e   :  { %6776 = vmatpush3.xpose.msra.mxu1 %v4571_v63  ;;  %124 = vadd.xlane.f32.xlu1 %v123_v43  ;;  %v7872_v43 = vand.u32 4294901760, %v5379_v61 }
 0x10f   :  { %6787 = vmatprep.subr.mxu1 %v7054_v0 }
 0x110   :  { %6783 = vmatpush3.xpose.msra.mxu0 %v7733_v2  ;;  %v5498_v10 = vsub.f32 %v5379_v61, %v7872_v43 }
 0x111   :  { %v861_v16 = vpop.f32.mrf.mxu1  ;;  %6778 = vmatmul.mubr.msk.f32.vlgmr.msra.gmra.mxu1 %vm229_vm1, %v7057_v60  ;;  %6794 = vmatprep.subr.mxu0 %v7054_v0 }
 0x112   :  { %v862_v17 = vadd.f32 %v861_v16, %v780_v62  ;;  %6788 = vmatpush3.xpose.msra.mxu1 %v7706_v11  ;;  %130 = vadd.xlane.f32.xlu1 %v129_v12  ;;  %v937_v18 = vpop.f32.mrf.mxu0 }
 0x113   :  { %v6443_v45 = vpop.f32.mrf.mxu1  ;;  %6785 = vmatmul.mubr.f32.vlgmr.msra.gmra.mxu0 %v7484_v35  ;;  %6789 = vmatprep.subr.mxu1 %v7054_v0 }
 0x114   :  { %v938_v31 = vadd.f32 %v937_v18, %v862_v17  ;;  %6795 = vmatpush3.xpose.msra.mxu0 %v4562_v32  ;;  %v6450_v8 = vpop.f32.mrf.mxu0  ;;  %6791 = vmatprep.mubr.msk.f32.mxu1 %vm7055_vm0, %v7054_v0  ;;  %v6982_v32 = vld [vmem:[#allocation6 + $0x5] sm:$0x1]  ;;  %v5499_v17 = vand.u32 4294901760, %v5498_v10 }
 0x115   :  { %6796 = vmatprep.subr.mxu0 %v7054_v0  ;;  %6798 = vmatprep.mubr.msk.f32.mxu0 %vm7055_vm0, %v7054_v0  ;;  %v149_v37 = vmul.f32 %v6982_v32, %v70_v58  ;;  %v7858_v58 = vand.u32 4294901760, %v5382_v4 }
 0x116   :  { %6790 = vmatpush3.xpose.msra.mxu1 %v7721_v13  ;;  %154 = vadd.xlane.f32.xlu1 %v153_v28  ;;  %v5500_v28 = vsub.f32 %v5498_v10, %v5499_v17 }
 0x117   :  { %6801 = vmatprep.subr.mxu1 %v7054_v0  ;;  %v165_v2 = vsel %vm77_vm2, %v149_v37, 0.0  ;;  %v7870_v5 = vsub.f32 %v5382_v4, %v7858_v58 }
 0x118   :  { %6797 = vmatpush3.xpose.msra.mxu0 %v4569_v40  ;;  %v5501_v8 = vand.u32 4294901760, %v5500_v28 }
 0x119   :  { %v1012_v55 = vpop.f32.mrf.mxu1  ;;  %6792 = vmatmul.mubr.f32.vlgmr.msra.gmra.mxu1 %v7498_v41  ;;  %6808 = vmatprep.subr.mxu0 %v7054_v0  ;;  %v5492_v12 = vand.u32 4294901760, %v7870_v5 }
 0x11a   :  { %v1013_v59 = vadd.f32 %v1012_v55, %v938_v31  ;;  %6802 = vmatpush3.xpose.msra.mxu1 %v7706_v11  ;;  %160 = vadd.xlane.f32.xlu1 %v159_v27  ;;  %v1089_v39 = vpop.f32.mrf.mxu0 }
 0x11b   :  { %v6457_v38 = vpop.f32.mrf.mxu1  ;;  %6799 = vmatmul.mubr.msk.f32.vlgmr.msra.gmra.mxu0 %vm229_vm1, %v7057_v60  ;;  %6803 = vmatprep.subr.mxu1 %v7054_v0  ;;  %v5493_v16 = vsub.f32 %v7870_v5, %v5492_v12 }
 0x11c   :  { %v1090_v40 = vadd.f32 %v1089_v39, %v1013_v59  ;;  %6809 = vmatpush3.xpose.msra.mxu0 %v7784_v42  ;;  %v6464_v11 = vpop.f32.mrf.mxu0  ;;  %6805 = vmatprep.mubr.msk.f32.mxu1 %vm7055_vm0, %v7054_v0 }
 0x11d   :  { %6810 = vmatprep.subr.mxu0 %v7054_v0  ;;  %6812 = vmatprep.mubr.msk.f32.mxu0 %vm7055_vm0, %v7054_v0 }
 0x11e   :  { %6804 = vmatpush3.xpose.msra.mxu1 %v7721_v13  ;;  %166 = vadd.xlane.f32.xlu1 %v165_v2 }
 0x11f   :  { %6815 = vmatprep.subr.mxu1 %v7054_v0 }
 0x120   :  { %6811 = vmatpush3.xpose.msra.mxu0 %v7798_v23 }
 0x121   :  { %v1162_v50 = vpop.f32.mrf.mxu1  ;;  %6806 = vmatmul.mubr.msk.f32.vlgmr.msra.gmra.mxu1 %vm229_vm1, %v7057_v60  ;;  %6822 = vmatprep.subr.mxu0 %v7054_v0 }
 0x122   :  { %v7845_v51 = vadd.f32 %v1162_v50, %v1090_v40  ;;  %6816 = vmatpush3.xpose.msra.mxu1 %v5029_v48  ;;  %v1248_v13 = vpop.f32.mrf.mxu0  ;;  %6819 = vmatprep.mubr.msk.f32.mxu1 %vm7055_vm0, %v7054_v0 }
 0x123   :  { %v6471_v53 = vpop.f32.mrf.mxu1  ;;  %6813 = vmatmul.mubr.f32.vlgmr.msra.gmra.mxu0 %v7520_v54  ;;  %6817 = vmatprep.subr.mxu1 %v7054_v0 }
 0x124   :  { %6823 = vmatpush3.xpose.msra.mxu0 %v7796_v21  ;;  %v6478_v57 = vpop.f32.mrf.mxu0  ;;  %6826 = vmatprep.mubr.msk.f32.mxu0 %vm7055_vm0, %v7054_v0 }
 0x125   :  { %6824 = vmatprep.subr.mxu0 %v7054_v0 }
 0x126   :  { %6818 = vmatpush3.xpose.msra.mxu1 %v5036_v52 }
 0x127   :  { %6829 = vmatprep.subr.mxu1 %v7054_v0 }
 0x128   :  { %6825 = vmatpush3.xpose.msra.mxu0 %v7812_v33 }
 0x129   :  { %v1329_v62 = vpop.f32.mrf.mxu1  ;;  %6820 = vmatmul.mubr.msk.f32.vlgmr.msra.gmra.mxu1 %vm229_vm1, %v7057_v60  ;;  %6836 = vmatprep.subr.mxu0 %v7054_v0 }
 0x12a   :  { %v1330_v9 = vadd.f32 %v1329_v62, %v1248_v13  ;;  %6830 = vmatpush3.xpose.msra.mxu1 %v7784_v42  ;;  %v1405_v63 = vpop.f32.mrf.mxu0  ;;  %6833 = vmatprep.mubr.msk.f32.mxu1 %vm7055_vm0, %v7054_v0 }
 0x12b   :  { %v6485_v20 = vpop.f32.mrf.mxu1  ;;  %6827 = vmatmul.mubr.f32.vlgmr.msra.gmra.mxu0 %v7484_v35  ;;  %6831 = vmatprep.subr.mxu1 %v7054_v0 }
 0x12c   :  { %v1406_v36 = vadd.f32 %v1405_v63, %v1330_v9  ;;  %6837 = vmatpush3.xpose.msra.mxu0 %v5027_v34  ;;  %v6492_v6 = vpop.f32.mrf.mxu0  ;;  %6840 = vmatprep.mubr.msk.f32.mxu0 %vm7055_vm0, %v7054_v0 }
 0x12d   :  { %6838 = vmatprep.subr.mxu0 %v7054_v0 }
 0x12e   :  { %6832 = vmatpush3.xpose.msra.mxu1 %v7798_v23 }
 0x12f   :  { %6843 = vmatprep.subr.mxu1 %v7054_v0 }
 0x130   :  { %6839 = vmatpush3.xpose.msra.mxu0 %v5034_v46 }
 0x131   :  { %v1480_v47 = vpop.f32.mrf.mxu1  ;;  %6834 = vmatmul.mubr.f32.vlgmr.msra.gmra.mxu1 %v7498_v41  ;;  %6850 = vmatprep.subr.mxu0 %v7054_v0 }
 0x132   :  { %v1481_v15 = vadd.f32 %v1480_v47, %v1406_v36  ;;  %6844 = vmatpush3.xpose.msra.mxu1 %v7784_v42  ;;  %v1557_v25 = vpop.f32.mrf.mxu0  ;;  %6847 = vmatprep.mubr.msk.f32.mxu1 %vm7055_vm0, %v7054_v0  ;;  %v5494_v42 = vand.u32 4294901760, %v5493_v16 }
 0x133   :  { %v6499_v18 = vpop.f32.mrf.mxu1  ;;  %6841 = vmatmul.mubr.msk.f32.vlgmr.msra.gmra.mxu0 %vm229_vm1, %v7057_v60  ;;  %6845 = vmatprep.subr.mxu1 %v7054_v0 }
 0x134   :  { %v1558_v21 = vadd.f32 %v1557_v25, %v1481_v15  ;;  %6851 = vmatpush3.xpose.msra.mxu0 %v7858_v58  ;;  %v6506_v45 = vpop.f32.mrf.mxu0  ;;  %6854 = vmatprep.mubr.msk.f32.mxu0 %vm7055_vm0, %v7054_v0 }
 0x135   :  { %6852 = vmatprep.subr.mxu0 %v7054_v0 }
 0x136   :  { %6846 = vmatpush3.xpose.msra.mxu1 %v7798_v23 }
 0x137   :  { %6857 = vmatprep.subr.mxu1 %v7054_v0 }
 0x138   :  { %6853 = vmatpush3.xpose.msra.mxu0 %v7872_v43 }
 0x139   :  { %v1630_v29 = vpop.f32.mrf.mxu1  ;;  %6848 = vmatmul.mubr.msk.f32.vlgmr.msra.gmra.mxu1 %vm229_vm1, %v7057_v60  ;;  %6864 = vmatprep.subr.mxu0 %v7054_v0 }
 0x13a   :  { %v7904_v30 = vadd.f32 %v1630_v29, %v1558_v21  ;;  %6858 = vmatpush3.xpose.msra.mxu1 %v5494_v42  ;;  %v1716_v31 = vpop.f32.mrf.mxu0  ;;  %6861 = vmatprep.mubr.msk.f32.mxu1 %vm7055_vm0, %v7054_v0 }
 0x13b   :  { %v6513_v23 = vpop.f32.mrf.mxu1  ;;  %6855 = vmatmul.mubr.f32.vlgmr.msra.gmra.mxu0 %v7520_v54  ;;  %6859 = vmatprep.subr.mxu1 %v7054_v0 }
 0x13c   :  { %6865 = vmatpush3.xpose.msra.mxu0 %v7870_v5  ;;  %v6520_v33 = vpop.f32.mrf.mxu0  ;;  %6868 = vmatprep.mubr.msk.f32.mxu0 %vm7055_vm0, %v7054_v0 }
 0x13d   :  { %6866 = vmatprep.subr.mxu0 %v7054_v0 }
 0x13e   :  { %6860 = vmatpush3.xpose.msra.mxu1 %v5501_v8 }
 0x13f   :  { %6871 = vmatprep.subr.mxu1 %v7054_v0 }
 0x140   :  { %6867 = vmatpush3.xpose.msra.mxu0 %v5498_v10 }
 0x141   :  { %v1797_v34 = vpop.f32.mrf.mxu1  ;;  %6862 = vmatmul.mubr.msk.f32.vlgmr.msra.gmra.mxu1 %vm229_vm1, %v7057_v60  ;;  %6878 = vmatprep.subr.mxu0 %v7054_v0 }
 0x142   :  { %v1798_v54 = vadd.f32 %v1797_v34, %v1716_v31  ;;  %6872 = vmatpush3.xpose.msra.mxu1 %v7858_v58  ;;  %v1873_v27 = vpop.f32.mrf.mxu0  ;;  %6875 = vmatprep.mubr.msk.f32.mxu1 %vm7055_vm0, %v7054_v0 }
 0x143   :  { %v6527_v32 = vpop.f32.mrf.mxu1  ;;  %6869 = vmatmul.mubr.f32.vlgmr.msra.gmra.mxu0 %v7484_v35  ;;  %6873 = vmatprep.subr.mxu1 %v7054_v0 }
 0x144   :  { %v1874_v37 = vadd.f32 %v1873_v27, %v1798_v54  ;;  %6879 = vmatpush3.xpose.msra.mxu0 %v5492_v12  ;;  %v6534_v55 = vpop.f32.mrf.mxu0  ;;  %6882 = vmatprep.mubr.msk.f32.mxu0 %vm7055_vm0, %v7054_v0 }
 0x145   :  { %6880 = vmatprep.subr.mxu0 %v7054_v0 }
 0x146   :  { %6874 = vmatpush3.xpose.msra.mxu1 %v7872_v43 }
 0x147   :  { %6885 = vmatprep.subr.mxu1 %v7054_v0 }
 0x148   :  { %6881 = vmatpush3.xpose.msra.mxu0 %v5499_v17 }
 0x149   :  { %v1948_v59 = vpop.f32.mrf.mxu1  ;;  %6876 = vmatmul.mubr.f32.vlgmr.msra.gmra.mxu1 %v7498_v41  ;;  %v7944_v10 = vpop.permute.xlu0 %5869 }
 0x14a   :  { %v1949_v39 = vadd.f32 %v1948_v59, %v1874_v37  ;;  %6886 = vmatpush3.xpose.msra.mxu1 %v7858_v58  ;;  %v2025_v35 = vpop.f32.mrf.mxu0  ;;  %6889 = vmatprep.mubr.msk.f32.mxu1 %vm7055_vm0, %v7054_v0 }
 0x14b   :  { %v6541_v1 = vpop.f32.mrf.mxu1  ;;  %6883 = vmatmul.mubr.msk.f32.vlgmr.msra.gmra.mxu0 %vm229_vm1, %v7057_v60  ;;  %6887 = vmatprep.subr.mxu1 %v7054_v0 }
 0x14c   :  { %v2026_v46 = vadd.f32 %v2025_v35, %v1949_v39  ;;  %v6548_v38 = vpop.f32.mrf.mxu0 }
 0x14d   :  { %v7942_v20 = vpop.permute.xlu1 %5878 }
 0x14e   :  { %6888 = vmatpush3.xpose.msra.mxu1 %v7872_v43 }
 0x151   :  { %v2098_v2 = vpop.f32.mrf.mxu1  ;;  %6890 = vmatmul.mubr.msk.f32.vlgmr.msra.gmra.mxu1 %vm229_vm1, %v7057_v60  ;;  %v7946_v25 = vpop.permute.xlu1 %5887 }
 0x152   :  { %v7938_v41 = vadd.f32 %v2098_v2, %v2026_v46  ;;  %v2184_v40 = vpop.f32.mrf.mxu0 }
 0x153   :  { %v6555_v11 = vpop.f32.mrf.mxu1 }
 0x154   :  { %v6562_v48 = vpop.f32.mrf.mxu0 }
 0x155   :  { %v7948_v29 = vpop.permute.xlu1 %5896 }
 0x159   :  { %v2265_v22 = vpop.f32.mrf.mxu1  ;;  %v7952_v27 = vpop.permute.xlu1 %5905 }
 0x15a   :  { %v2266_v49 = vadd.f32 %v2265_v22, %v2184_v40  ;;  %v2341_v50 = vpop.f32.mrf.mxu0 }
 0x15b   :  { %v6569_v13 = vpop.f32.mrf.mxu1 }
 0x15c   :  { %v2342_v52 = vadd.f32 %v2341_v50, %v2266_v49  ;;  %v6576_v53 = vpop.f32.mrf.mxu0 }
 0x15d   :  { %v7954_v59 = vpop.permute.xlu1 %5914 }
 0x161   :  { %v2416_v0 = vpop.f32.mrf.mxu1 }
 0x162   :  { %v2417_v4 = vadd.f32 %v2416_v0, %v2342_v52  ;;  %v2493_v56 = vpop.f32.mrf.mxu0 }
 0x163   :  { %v6583_v57 = vpop.f32.mrf.mxu1 }
 0x164   :  { %v2494_v58 = vadd.f32 %v2493_v56, %v2417_v4  ;;  %v6590_v61 = vpop.f32.mrf.mxu0 }
 0x169   :  { %v2566_v62 = vpop.f32.mrf.mxu1 }
 0x16a   :  { %v7940_v9 = vadd.f32 %v2566_v62, %v2494_v58  ;;  %v2652_v60 = vpop.f32.mrf.mxu0 }
 0x16b   :  { %v6597_v63 = vpop.f32.mrf.mxu1 }
 0x16c   :  { %v6604_v5 = vpop.f32.mrf.mxu0 }
 0x171   :  { %v2733_v43 = vpop.f32.mrf.mxu1 }
 0x172   :  { %v2734_v36 = vadd.f32 %v2733_v43, %v2652_v60  ;;  %v2809_v6 = vpop.f32.mrf.mxu0 }
 0x173   :  { %v6611_v12 = vpop.f32.mrf.mxu1 }
 0x174   :  { %v2810_v47 = vadd.f32 %v2809_v6, %v2734_v36  ;;  %v6618_v15 = vpop.f32.mrf.mxu0 }
 0x176   :  { %v119_v16 = vpop.xlane.xlu0 %118 }
 0x177   :  { %v133_v11 = vmax.f32 %v119_v16, 1e-24  ;;  %v5872_v16 = vlaneseq }
 0x179   :  { %v2884_v17 = vpop.f32.mrf.mxu1 }
 0x17a   :  { %v2885_v18 = vadd.f32 %v2884_v17, %v2810_v47  ;;  %v2961_v21 = vpop.f32.mrf.mxu0 }
 0x17b   :  { %v6625_v45 = vpop.f32.mrf.mxu1 }
 0x17c   :  { %v2962_v42 = vadd.f32 %v2961_v21, %v2885_v18  ;;  %v6632_v28 = vpop.f32.mrf.mxu0 }
 0x17e   :  { %v128_v31 = vpop.xlane.xlu0 %127 }
 0x17f   :  { %v136_v8 = vmax.f32 %v128_v31, 1e-24 }
 0x181   :  { %v3034_v23 = vpop.f32.mrf.mxu1  ;;  %6917 = vrsqrt.f32 %v136_v8  ;;  %v5873_v8 = vshrl.u32 %v5872_v16, 7 }
 0x182   :  { %v7950_v33 = vadd.f32 %v3034_v23, %v2962_v42  ;;  %v3132_v34 = vpop.f32.mrf.mxu0 }
 0x183   :  { %v6639_v54 = vpop.f32.mrf.mxu1 }
 0x184   :  { %v6646_v32 = vpop.f32.mrf.mxu0 }
 0x185   :  { %v152_v37 = vpop.xlane.xlu0 %151 }
 0x186   :  { %v168_v17 = vmul.f32 %v7532_v3, %v152_v37 }
 0x189   :  { %v3213_v55 = vpop.f32.mrf.mxu1  ;;  %v158_v35 = vpop.xlane.xlu0 %157 }
 0x18a   :  { %v3289_v39 = vpop.f32.mrf.mxu0  ;;  %v3214_v2 = vadd.f32 %v3213_v55, %v3132_v34  ;;  %v170_v34 = vmul.f32 %v7545_v7, %v158_v35 }
 0x18b   :  { %v6653_v1 = vpop.f32.mrf.mxu1 }
 0x18c   :  { %v6660_v46 = vpop.f32.mrf.mxu0  ;;  %v3290_v52 = vadd.f32 %v3289_v39, %v3214_v2 }
 0x18e   :  { %v6918_v38 = vpop.eup %6917  ;;  %v164_v40 = vpop.xlane.xlu0 %163 }
 0x18f   :  { %v116_v48 = vpop.xlane.xlu1 %115  ;;  %v172_v22 = vmul.f32 %v7581_v19, %v164_v40 }
 0x190   :  { %v132_v49 = vmax.f32 %v116_v48, 1e-24 }
 0x191   :  { %v3364_v50 = vpop.f32.mrf.mxu1  ;;  %v178_v13 = vmul.f32 %v6918_v38, %v172_v22  ;;  %v7964_v38 = vsub.s32 0, %v5873_v8 }
 0x192   :  { %6919 = vrsqrt.f32 %v132_v49  ;;  %v3365_v56 = vadd.f32 %v3364_v50, %v3290_v52 }
 0x193   :  { %6921 = vrsqrt.f32 %v133_v11  ;;  %v6667_v53 = vpop.f32.mrf.mxu1  ;;  %v3441_v0 = vpop.f32.mrf.mxu0  ;;  %v184_v4 = vmul.f32 14.285714, %v178_v13  ;;  %v5875_v22 = vrot.slane %v7944_v10, %v7964_v38 }
 0x194   :  { %v122_v57 = vpop.xlane.xlu1 %121  ;;  %v3442_v62 = vadd.f32 %v3441_v0, %v3365_v56 }
 0x195   :  { %v134_v58 = vmax.f32 %v122_v57, 1e-24  ;;  %v6674_v61 = vpop.f32.mrf.mxu0  ;;  %203 = vst.msk [vmem:[#allocation4 + $0x4] sm:$0x1] %vm192_vm3, %v184_v4  ;;  %209 = vst.msk [vmem:[#allocation2 + $0x4] sm:$0x1] %vm192_vm3, %v184_v4 }
 0x197   :  { %6923 = vrsqrt.f32 %v134_v58 }
 0x198   :  { %v125_v19 = vpop.xlane.xlu1 %124 }
 0x199   :  { %v135_v60 = vmax.f32 %v125_v19, 1e-24  ;;  %v3514_v63 = vpop.f32.mrf.mxu1 }
 0x19a   :  { %v3515_v5 = vadd.f32 %v3514_v63, %v3442_v62 }
 0x19b   :  { %6925 = vrsqrt.f32 %v135_v60  ;;  %v6681_v43 = vpop.f32.mrf.mxu1  ;;  %v3597_v36 = vpop.f32.mrf.mxu0 }
 0x19c   :  { %v5843_v6 = vmax.f32 %v3515_v5, 1e-24  ;;  %v131_v12 = vpop.xlane.xlu1 %130 }
 0x19d   :  { %v137_v47 = vmax.f32 %v131_v12, 1e-24  ;;  %v6688_v15 = vpop.f32.mrf.mxu0 }
 0x19e   :  { %6927 = vrsqrt.f32 %v5843_v6 }
 0x19f   :  { %v6920_v18 = vpop.eup %6919  ;;  %6929 = vrsqrt.f32 %v137_v47 }
 0x1a0   :  { %v6922_v21 = vpop.eup %6921  ;;  %v174_v45 = vmul.f32 %v6920_v18, %v168_v17  ;;  %v155_v42 = vpop.xlane.xlu1 %154  ;;  %v5884_v17 = vrot.slane %v7942_v20, %v7964_v38 }
 0x1a1   :  { %v169_v28 = vmul.f32 %v7550_v26, %v155_v42  ;;  %v3678_v31 = vpop.f32.mrf.mxu1 }
 0x1a2   :  { %v180_v23 = vmul.f32 14.285714, %v174_v45  ;;  %v3679_v26 = vadd.f32 %v3678_v31, %v3597_v36 }
 0x1a3   :  { %v175_v54 = vmul.f32 %v6922_v21, %v169_v28  ;;  %v6695_v32 = vpop.f32.mrf.mxu1  ;;  %v3754_v55 = vpop.f32.mrf.mxu0 }
 0x1a4   :  { %v6924_v39 = vpop.eup %6923  ;;  %199 = vst.msk [vmem:[#allocation4] sm:$0x1] %vm192_vm3, %v180_v23  ;;  %205 = vst.msk [vmem:[#allocation2] sm:$0x1] %vm192_vm3, %v180_v23  ;;  %v161_v3 = vpop.xlane.xlu1 %160  ;;  %v3755_v49 = vadd.f32 %v3754_v55, %v3679_v26 }
 0x1a5   :  { %v176_v37 = vmul.f32 %v6924_v39, %v170_v34  ;;  %v181_v1 = vmul.f32 14.285714, %v175_v54  ;;  %v6702_v46 = vpop.f32.mrf.mxu0  ;;  %v171_v7 = vmul.f32 %v7561_v14, %v161_v3 }
 0x1a7   :  { %v182_v2 = vmul.f32 14.285714, %v176_v37  ;;  %200 = vst.msk [vmem:[#allocation4 + $0x1] sm:$0x1] %vm192_vm3, %v181_v1  ;;  %206 = vst.msk [vmem:[#allocation2 + $0x1] sm:$0x1] %vm192_vm3, %v181_v1 }
 0x1a8   :  { %v6926_v35 = vpop.eup %6925  ;;  %v167_v40 = vpop.xlane.xlu1 %166 }
 0x1a9   :  { %201 = vst.msk [vmem:[#allocation4 + $0x2] sm:$0x1] %vm192_vm3, %v182_v2  ;;  %207 = vst.msk [vmem:[#allocation2 + $0x2] sm:$0x1] %vm192_vm3, %v182_v2  ;;  %v177_v11 = vmul.f32 %v6926_v35, %v171_v7  ;;  %v3829_v48 = vpop.f32.mrf.mxu1  ;;  %v173_v52 = vmul.f32 %v7588_v24, %v167_v40  ;;  %v5893_v35 = vrot.slane %v7946_v25, %v7964_v38 }
 0x1aa   :  { %v3830_v14 = vadd.f32 %v3829_v48, %v3755_v49 }
 0x1ab   :  { %v6928_v50 = vpop.eup %6927  ;;  %v183_v13 = vmul.f32 14.285714, %v177_v11  ;;  %v6709_v53 = vpop.f32.mrf.mxu1 }
 0x1ac   :  { %v3906_v0 = vpop.f32.mrf.mxu0  ;;  %v6930_v4 = vpop.eup %6929  ;;  %v5855_v56 = vmul.f32 %v6928_v50, %v7770_v44 }
 0x1ad   :  { %202 = vst.msk [vmem:[#allocation4 + $0x3] sm:$0x1] %vm192_vm3, %v183_v13  ;;  %208 = vst.msk [vmem:[#allocation2 + $0x3] sm:$0x1] %vm192_vm3, %v183_v13  ;;  %v179_v57 = vmul.f32 %v6930_v4, %v173_v52  ;;  %v3907_v62 = vadd.f32 %v3906_v0, %v3830_v14 }
 0x1ae   :  { %v6716_v58 = vpop.f32.mrf.mxu0  ;;  %v7977_v61 = vmul.f32 %v5875_v22, %v5855_v56 }
 0x1af   :  { %v185_v10 = vmul.f32 14.285714, %v179_v57 }
 0x1b0   :  { %v5934_v24 = vsel %vm5933_vm4, %v7977_v61, -inf }
 0x1b1   :  { %204 = vst.msk [vmem:[#allocation4 + $0x5] sm:$0x1] %vm192_vm3, %v185_v10  ;;  %210 = vst.msk [vmem:[#allocation2 + $0x5] sm:$0x1] %vm192_vm3, %v185_v10  ;;  %v3979_v19 = vpop.f32.mrf.mxu1  ;;  %5935 = vmax.xlane.f32.xlu0 %v5934_v24 }
 0x1b2   :  { %v3980_v44 = vadd.f32 %v3979_v19, %v3907_v62 }
 0x1b3   :  { %v6723_v60 = vpop.f32.mrf.mxu1  ;;  %v4062_v63 = vpop.f32.mrf.mxu0 }
 0x1b4   :  { %v5844_v5 = vmax.f32 %v3980_v44, 1e-24  ;;  %v5902_v60 = vrot.slane %v7948_v29, %v7964_v38 }
 0x1b5   :  { %v6730_v43 = vpop.f32.mrf.mxu0 }
 0x1b6   :  { %6931 = vrsqrt.f32 %v5844_v5 }
 0x1b9   :  { %v4143_v36 = vpop.f32.mrf.mxu1 }
 0x1ba   :  { %v4144_v15 = vadd.f32 %v4143_v36, %v4062_v63 }
 0x1bb   :  { %v6737_v6 = vpop.f32.mrf.mxu1  ;;  %v4219_v12 = vpop.f32.mrf.mxu0 }
 0x1bc   :  { %v4220_v18 = vadd.f32 %v4219_v12, %v4144_v15 }
 0x1bd   :  { %v6744_v47 = vpop.f32.mrf.mxu0 }
 0x1c1   :  { %v4294_v16 = vpop.f32.mrf.mxu1 }
 0x1c2   :  { %v4295_v28 = vadd.f32 %v4294_v16, %v4220_v18 }
 0x1c3   :  { %v6932_v21 = vpop.eup %6931  ;;  %v6751_v45 = vpop.f32.mrf.mxu1 }
 0x1c4   :  { %v4371_v42 = vpop.f32.mrf.mxu0  ;;  %v5856_v31 = vmul.f32 %v6932_v21, %v7845_v51 }
 0x1c5   :  { %v4372_v34 = vadd.f32 %v4371_v42, %v4295_v28 }
 0x1c6   :  { %v6758_v8 = vpop.f32.mrf.mxu0  ;;  %v7986_v23 = vmul.f32 %v5884_v17, %v5856_v31 }
 0x1c8   :  { %v5937_v54 = vsel %vm5933_vm4, %v7986_v23, -inf }
 0x1c9   :  { %v4444_v32 = vpop.f32.mrf.mxu1  ;;  %5938 = vmax.xlane.f32.xlu1 %v5937_v54 }
 0x1ca   :  { %v4445_v55 = vadd.f32 %v4444_v32, %v4372_v34 }
 0x1cb   :  { %v6765_v39 = vpop.f32.mrf.mxu1  ;;  %v4527_v3 = vpop.f32.mrf.mxu0 }
 0x1cc   :  { %v5845_v20 = vmax.f32 %v4445_v55, 1e-24  ;;  %v5911_v55 = vrot.slane %v7952_v27, %v7964_v38 }
 0x1cd   :  { %v6772_v37 = vpop.f32.mrf.mxu0 }
 0x1ce   :  { %6933 = vrsqrt.f32 %v5845_v20 }
 0x1d1   :  { %v4608_v1 = vpop.f32.mrf.mxu1 }
 0x1d2   :  { %v4609_v51 = vadd.f32 %v4608_v1, %v4527_v3 }
 0x1d3   :  { %v6779_v46 = vpop.f32.mrf.mxu1  ;;  %v4684_v26 = vpop.f32.mrf.mxu0 }
 0x1d4   :  { %v4685_v40 = vadd.f32 %v4684_v26, %v4609_v51 }
 0x1d5   :  { %v6786_v2 = vpop.f32.mrf.mxu0 }
 0x1d9   :  { %v4759_v7 = vpop.f32.mrf.mxu1 }
 0x1da   :  { %v4760_v49 = vadd.f32 %v4759_v7, %v4685_v40 }
 0x1db   :  { %v6934_v11 = vpop.eup %6933  ;;  %v6793_v48 = vpop.f32.mrf.mxu1 }
 0x1dc   :  { %v4836_v22 = vpop.f32.mrf.mxu0  ;;  %v5857_v50 = vmul.f32 %v6934_v11, %v7904_v30 }
 0x1dd   :  { %v4837_v53 = vadd.f32 %v4836_v22, %v4760_v49  ;;  %v5920_v22 = vrot.slane %v7954_v59, %v7964_v38  ;;  %v8028_v59 = vld [vmem:[#allocation2 + $0x1] sm:$0x1] }
 0x1de   :  { %v6800_v13 = vpop.f32.mrf.mxu0  ;;  %v7993_v52 = vmul.f32 %v5893_v35, %v5857_v50 }
 0x1df   :  { %v8018_v13 = vld [vmem:[#allocation2] sm:$0x1] }
 0x1e0   :  { %v5940_v0 = vsel %vm5933_vm4, %v7993_v52, -inf }
 0x1e1   :  { %v4909_v4 = vpop.f32.mrf.mxu1  ;;  %5941 = vmax.xlane.f32.xlu0 %v5940_v0 }
 0x1e2   :  { %v4910_v14 = vadd.f32 %v4909_v4, %v4837_v53 }
 0x1e3   :  { %v6807_v56 = vpop.f32.mrf.mxu1  ;;  %v4992_v57 = vpop.f32.mrf.mxu0 }
 0x1e4   :  { %v5846_v25 = vmax.f32 %v4910_v14, 1e-24 }
 0x1e5   :  { %v6814_v58 = vpop.f32.mrf.mxu0 }
 0x1e6   :  { %6935 = vrsqrt.f32 %v5846_v25 }
 0x1e9   :  { %v5073_v10 = vpop.f32.mrf.mxu1 }
 0x1ea   :  { %v5074_v30 = vadd.f32 %v5073_v10, %v4992_v57  ;;  %v8038_v57 = vld [vmem:[#allocation2 + $0x2] sm:$0x1] }
 0x1eb   :  { %v6821_v62 = vpop.f32.mrf.mxu1  ;;  %v5149_v24 = vpop.f32.mrf.mxu0 }
 0x1ec   :  { %v5150_v63 = vadd.f32 %v5149_v24, %v5074_v30  ;;  %v8048_v62 = vld [vmem:[#allocation2 + $0x3] sm:$0x1] }
 0x1ed   :  { %v6828_v19 = vpop.f32.mrf.mxu0 }
 0x1f1   :  { %v5224_v44 = vpop.f32.mrf.mxu1 }
 0x1f2   :  { %v5225_v6 = vadd.f32 %v5224_v44, %v5150_v63  ;;  %v8058_v44 = vld [vmem:[#allocation2 + $0x4] sm:$0x1] }
 0x1f3   :  { %v6936_v5 = vpop.eup %6935  ;;  %v6835_v43 = vpop.f32.mrf.mxu1 }
 0x1f4   :  { %v5301_v36 = vpop.f32.mrf.mxu0  ;;  %v5858_v12 = vmul.f32 %v6936_v5, %v7938_v41  ;;  %v8068_v43 = vld [vmem:[#allocation2 + $0x5] sm:$0x1] }
 0x1f5   :  { %v5302_v16 = vadd.f32 %v5301_v36, %v5225_v6 }
 0x1f6   :  { %v6842_v47 = vpop.f32.mrf.mxu0  ;;  %v8000_v15 = vmul.f32 %v5902_v60, %v5858_v12 }
 0x1f8   :  { %v5943_v17 = vsel %vm5933_vm4, %v8000_v15, -inf }
 0x1f9   :  { %v5374_v18 = vpop.f32.mrf.mxu1  ;;  %5944 = vmax.xlane.f32.xlu1 %v5943_v17 }
 0x1fa   :  { %v5375_v21 = vadd.f32 %v5374_v18, %v5302_v16 }
 0x1fb   :  { %v6849_v45 = vpop.f32.mrf.mxu1  ;;  %v5457_v42 = vpop.f32.mrf.mxu0 }
 0x1fc   :  { %v5847_v29 = vmax.f32 %v5375_v21, 1e-24 }
 0x1fd   :  { %v6856_v28 = vpop.f32.mrf.mxu0 }
 0x1fe   :  { %6937 = vrsqrt.f32 %v5847_v29 }
 0x201   :  { %v5538_v31 = vpop.f32.mrf.mxu1 }
 0x202   :  { %v5539_v41 = vadd.f32 %v5538_v31, %v5457_v42 }
 0x203   :  { %v6863_v8 = vpop.f32.mrf.mxu1  ;;  %v5614_v34 = vpop.f32.mrf.mxu0 }
 0x204   :  { %v5615_v39 = vadd.f32 %v5614_v34, %v5539_v41 }
 0x205   :  { %v6870_v54 = vpop.f32.mrf.mxu0 }
 0x209   :  { %v5689_v32 = vpop.f32.mrf.mxu1 }
 0x20a   :  { %v5690_v1 = vadd.f32 %v5689_v32, %v5615_v39 }
 0x20b   :  { %v6938_v3 = vpop.eup %6937  ;;  %v6877_v20 = vpop.f32.mrf.mxu1 }
 0x20c   :  { %v5766_v37 = vpop.f32.mrf.mxu0  ;;  %v5859_v46 = vmul.f32 %v6938_v3, %v7940_v9 }
 0x20d   :  { %v5767_v51 = vadd.f32 %v5766_v37, %v5690_v1 }
 0x20e   :  { %v6884_v26 = vpop.f32.mrf.mxu0  ;;  %v8007_v2 = vmul.f32 %v5911_v55, %v5859_v46 }
 0x210   :  { %v5946_v7 = vsel %vm5933_vm4, %v8007_v2, -inf }
 0x211   :  { %v5839_v35 = vpop.f32.mrf.mxu1  ;;  %5947 = vmax.xlane.f32.xlu0 %v5946_v7 }
 0x212   :  { %v5840_v40 = vadd.f32 %v5839_v35, %v5767_v51 }
 0x213   :  { %v6891_v11 = vpop.f32.mrf.mxu1 }
 0x214   :  { %v5848_v48 = vmax.f32 %v5840_v40, 1e-24 }
 0x216   :  { %6939 = vrsqrt.f32 %v5848_v48 }
 0x223   :  { %v6940_v27 = vpop.eup %6939 }
 0x224   :  { %v5860_v49 = vmul.f32 %v6940_v27, %v7950_v33 }
 0x226   :  { %v8014_v9 = vmul.f32 %v5920_v22, %v5860_v49 }
 0x228   :  { %v5949_v50 = vsel %vm5933_vm4, %v8014_v9, -inf }
 0x229   :  { %5950 = vmax.xlane.f32.xlu1 %v5949_v50 }
 0x23a   :  { %v5936_v53 = vpop.xlane.xlu0 %5935 }
 0x23b   :  { %v8021_v0 = vmax.f32 %v8018_v13, %v5936_v53  ;;  %v5958_v53 = vld [vmem:[#allocation3] sm:$0x1] }
 0x23d   :  { %v5964_v4 = vsub.f32 %v8018_v13, %v8021_v0  ;;  %6091 = vst.msk [vmem:[#allocation2] sm:$0x1] %vm192_vm3, %v8021_v0  ;;  %5990 = vperm.xlu0 %6903, %v8021_v0   ;;  %v5959_v0 = vld [vmem:[#allocation3 + $0x1] sm:$0x1] }
 0x23f   :  { %v5970_v22 = vmul.f32 1.442695, %v5964_v4 }
 0x252   :  { %v5939_v33 = vpop.xlane.xlu1 %5938 }
 0x253   :  { %v8031_v14 = vmax.f32 %v8028_v59, %v5939_v33 }
 0x255   :  { %v5965_v56 = vsub.f32 %v8028_v59, %v8031_v14  ;;  %6092 = vst.msk [vmem:[#allocation2 + $0x1] sm:$0x1] %vm192_vm3, %v8031_v14  ;;  %5999 = vperm.xlu1 %6904, %v8031_v14   ;;  %v6130_v59 = vld [vmem:[#allocation4] sm:$0x1] }
 0x26a   :  { %v5942_v25 = vpop.xlane.xlu0 %5941 }
 0x26b   :  { %v8041_v58 = vmax.f32 %v8038_v57, %v5942_v25 }
 0x26d   :  { %v5966_v10 = vsub.f32 %v8038_v57, %v8041_v58  ;;  %6093 = vst.msk [vmem:[#allocation2 + $0x2] sm:$0x1] %vm192_vm3, %v8041_v58  ;;  %6008 = vperm.xlu1 %6904, %v8041_v58  }
 0x282   :  { %v5945_v24 = vpop.xlane.xlu1 %5944 }
 0x283   :  { %v8051_v19 = vmax.f32 %v8048_v62, %v5945_v24 }
 0x285   :  { %v5967_v30 = vsub.f32 %v8048_v62, %v8051_v19  ;;  %6094 = vst.msk [vmem:[#allocation2 + $0x3] sm:$0x1] %vm192_vm3, %v8051_v19  ;;  %6017 = vperm.xlu0 %6903, %v8051_v19  }
 0x29a   :  { %v5948_v60 = vpop.xlane.xlu0 %5947 }
 0x29b   :  { %v8061_v63 = vmax.f32 %v8058_v44, %v5948_v60 }
 0x29d   :  { %v5968_v5 = vsub.f32 %v8058_v44, %v8061_v63  ;;  %6095 = vst.msk [vmem:[#allocation2 + $0x4] sm:$0x1] %vm192_vm3, %v8061_v63  ;;  %6026 = vperm.xlu1 %6904, %v8061_v63  }
 0x2b2   :  { %v5951_v36 = vpop.xlane.xlu1 %5950 }
 0x2b3   :  { %v8071_v6 = vmax.f32 %v8068_v43, %v5951_v36 }
 0x2b5   :  { %v5969_v12 = vsub.f32 %v8068_v43, %v8071_v6  ;;  %6096 = vst.msk [vmem:[#allocation2 + $0x5] sm:$0x1] %vm192_vm3, %v8071_v6  ;;  %6035 = vperm.xlu0 %6903, %v8071_v6  }
 0x2b8   :  { %v5991_v47 = vpop.permute.xlu0 %5990 }
 0x2b9   :  { %v5996_v16 = vrot.slane %v5991_v47, %v7964_v38 }
 0x2bb   :  { %v6042_v17 = vsub.f32 %v7977_v61, %v5996_v16 }
 0x2bd   :  { %v6048_v18 = vmul.f32 1.442695, %v6042_v17  ;;  %v6100_v17 = vld [vmem:[#allocation2] sm:$0x1] }
 0x2bf   :  { %6941 = vpow2.f32 %v6048_v18  ;;  %v5974_v18 = vmul.f32 1.442695, %v5966_v10  ;;  %v6101_v10 = vld [vmem:[#allocation2 + $0x1] sm:$0x1] }
 0x2cc   :  { %v6942_v21 = vpop.eup %6941 }
 0x2cd   :  { %v6060_v45 = vsel %vm5933_vm4, %v6942_v21, 0.0 }
 0x2ce   :  { %6061 = vadd.xlane.f32.xlu1 %v6060_v45 }
 0x2d0   :  { %v6000_v42 = vpop.permute.xlu1 %5999 }
 0x2d1   :  { %v6005_v29 = vrot.slane %v6000_v42, %v7964_v38  ;;  %v5960_v42 = vld [vmem:[#allocation3 + $0x2] sm:$0x1] }
 0x2d3   :  { %v6043_v28 = vsub.f32 %v7986_v23, %v6005_v29 }
 0x2d5   :  { %v6050_v31 = vmul.f32 1.442695, %v6043_v28 }
 0x2d7   :  { %6943 = vpow2.f32 %v6050_v31 }
 0x2e4   :  { %v6944_v8 = vpop.eup %6943 }
 0x2e5   :  { %v6063_v34 = vsel %vm5933_vm4, %v6944_v8, 0.0  ;;  %v5976_v8 = vmul.f32 1.442695, %v5967_v30  ;;  %v6102_v30 = vld [vmem:[#allocation2 + $0x2] sm:$0x1] }
 0x2e6   :  { %6064 = vadd.xlane.f32.xlu0 %v6063_v34 }
 0x2e8   :  { %v6009_v54 = vpop.permute.xlu1 %6008 }
 0x2e9   :  { %v6014_v61 = vrot.slane %v6009_v54, %v7964_v38  ;;  %v6131_v54 = vld [vmem:[#allocation4 + $0x1] sm:$0x1] }
 0x2eb   :  { %v6044_v41 = vsub.f32 %v7993_v52, %v6014_v61 }
 0x2ed   :  { %v6052_v32 = vmul.f32 1.442695, %v6044_v41 }
 0x2ef   :  { %6945 = vpow2.f32 %v6052_v32 }
 0x2fc   :  { %v6946_v55 = vpop.eup %6945 }
 0x2fd   :  { %v6066_v39 = vsel %vm5933_vm4, %v6946_v55, 0.0  ;;  %v5961_v55 = vld [vmem:[#allocation3 + $0x3] sm:$0x1] }
 0x2fe   :  { %6067 = vadd.xlane.f32.xlu0 %v6066_v39 }
 0x300   :  { %v6018_v3 = vpop.permute.xlu0 %6017 }
 0x301   :  { %v6023_v23 = vrot.slane %v6018_v3, %v7964_v38 }
 0x303   :  { %v6045_v20 = vsub.f32 %v8000_v15, %v6023_v23 }
 0x305   :  { %v6054_v37 = vmul.f32 1.442695, %v6045_v20  ;;  %v5978_v20 = vmul.f32 1.442695, %v5968_v5  ;;  %v6103_v5 = vld [vmem:[#allocation2 + $0x3] sm:$0x1] }
 0x307   :  { %6947 = vpow2.f32 %v6054_v37 }
 0x314   :  { %v6948_v1 = vpop.eup %6947 }
 0x315   :  { %v6069_v46 = vsel %vm5933_vm4, %v6948_v1, 0.0  ;;  %v6132_v1 = vld [vmem:[#allocation4 + $0x2] sm:$0x1] }
 0x316   :  { %6070 = vadd.xlane.f32.xlu1 %v6069_v46 }
 0x318   :  { %v6027_v26 = vpop.permute.xlu1 %6026 }
 0x319   :  { %v6032_v52 = vrot.slane %v6027_v26, %v7964_v38 }
 0x31b   :  { %v6046_v51 = vsub.f32 %v8007_v2, %v6032_v52 }
 0x31d   :  { %v6056_v7 = vmul.f32 1.442695, %v6046_v51  ;;  %v5962_v51 = vld [vmem:[#allocation3 + $0x4] sm:$0x1] }
 0x31f   :  { %6949 = vpow2.f32 %v6056_v7 }
 0x32c   :  { %v6950_v35 = vpop.eup %6949 }
 0x32d   :  { %v6072_v40 = vsel %vm5933_vm4, %v6950_v35, 0.0 }
 0x32e   :  { %6073 = vadd.xlane.f32.xlu0 %v6072_v40 }
 0x330   :  { %v6036_v11 = vpop.permute.xlu0 %6035 }
 0x331   :  { %v6041_v15 = vrot.slane %v6036_v11, %v7964_v38  ;;  %v5972_v38 = vmul.f32 1.442695, %v5965_v56  ;;  %v5980_v11 = vmul.f32 1.442695, %v5969_v12  ;;  %v6104_v12 = vld [vmem:[#allocation2 + $0x4] sm:$0x1] }
 0x333   :  { %v6047_v48 = vsub.f32 %v8014_v9, %v6041_v15 }
 0x335   :  { %v6058_v27 = vmul.f32 1.442695, %v6047_v48  ;;  %v6133_v48 = vld [vmem:[#allocation4 + $0x3] sm:$0x1] }
 0x337   :  { %6951 = vpow2.f32 %v6058_v27 }
 0x338   :  { %6953 = vpow2.f32 %v5970_v22 }
 0x339   :  { %6955 = vpow2.f32 %v5972_v38 }
 0x344   :  { %v6952_v49 = vpop.eup %6951 }
 0x345   :  { %v6075_v2 = vsel %vm5933_vm4, %v6952_v49, 0.0  ;;  %v6954_v50 = vpop.eup %6953 }
 0x346   :  { %6076 = vadd.xlane.f32.xlu1 %v6075_v2  ;;  %v5982_v33 = vmul.f32 %v6954_v50, %v5958_v53  ;;  %v6956_v13 = vpop.eup %6955  ;;  %v5963_v2 = vld [vmem:[#allocation3 + $0x5] sm:$0x1] }
 0x347   :  { %v5983_v4 = vmul.f32 %v6956_v13, %v5959_v0 }
 0x357   :  { %v6062_v25 = vpop.xlane.xlu1 %6061 }
 0x358   :  { %v6078_v24 = vadd.f32 %v6062_v25, %v5982_v33 }
 0x35a   :  { %6085 = vst.msk [vmem:[#allocation3] sm:$0x1] %vm192_vm3, %v6078_v24  ;;  %v6134_v24 = vld [vmem:[#allocation4 + $0x4] sm:$0x1] }
 0x361   :  { %v6106_v9 = vld [vmem:[#allocation3] sm:$0x1] }
 0x362   :  { %6957 = vlog2.f32 %v6106_v9 }
 0x363   :  { %6959 = vpow2.f32 %v5974_v18 }
 0x36f   :  { %v6958_v60 = vpop.eup %6957  ;;  %v6065_v36 = vpop.xlane.xlu0 %6064 }
 0x370   :  { %v6113_v47 = vmul.f32 0.6931472, %v6958_v60  ;;  %v6079_v16 = vadd.f32 %v6065_v36, %v5983_v4  ;;  %v6960_v45 = vpop.eup %6959  ;;  %v6105_v4 = vld [vmem:[#allocation2 + $0x5] sm:$0x1]  ;;  %v6135_v36 = vld [vmem:[#allocation4 + $0x5] sm:$0x1] }
 0x371   :  { %v5984_v29 = vmul.f32 %v6960_v45, %v5960_v42 }
 0x372   :  { %v6124_v21 = vadd.f32 %v6113_v47, %v6100_v17  ;;  %6086 = vst.msk [vmem:[#allocation3 + $0x1] sm:$0x1] %vm192_vm3, %v6079_v16 }
 0x374   :  { %v6136_v14 = vsub.f32 %v6124_v21, %v6130_v59 }
 0x376   :  { %6142 = vst.msk [vmem:[%s8147_s3] sm:$0x1] %vm192_vm3, %v6136_v14 }
 0x379   :  { %v6107_v56 = vld [vmem:[#allocation3 + $0x1] sm:$0x1] }
 0x37a   :  { %6961 = vlog2.f32 %v6107_v56 }
 0x37b   :  { %6963 = vpow2.f32 %v5976_v8 }
 0x387   :  { %v6962_v28 = vpop.eup %6961  ;;  %v6068_v31 = vpop.xlane.xlu0 %6067 }
 0x388   :  { %v6115_v57 = vmul.f32 0.6931472, %v6962_v28  ;;  %v6080_v58 = vadd.f32 %v6068_v31, %v5984_v29  ;;  %v6964_v32 = vpop.eup %6963 }
 0x389   :  { %v5985_v39 = vmul.f32 %v6964_v32, %v5961_v55 }
 0x38a   :  { %v6125_v34 = vadd.f32 %v6115_v57, %v6101_v10  ;;  %6087 = vst.msk [vmem:[#allocation3 + $0x2] sm:$0x1] %vm192_vm3, %v6080_v58 }
 0x38c   :  { %v6137_v61 = vsub.f32 %v6125_v34, %v6131_v54 }
 0x38e   :  { %6143 = vst.msk [vmem:[%s8147_s3 + $0x1] sm:$0x1] %vm192_vm3, %v6137_v61 }
 0x391   :  { %v6108_v41 = vld [vmem:[#allocation3 + $0x2] sm:$0x1] }
 0x392   :  { %6965 = vlog2.f32 %v6108_v41 }
 0x393   :  { %6967 = vpow2.f32 %v5978_v20 }
 0x39f   :  { %v6966_v3 = vpop.eup %6965  ;;  %v6071_v23 = vpop.xlane.xlu1 %6070 }
 0x3a0   :  { %v6117_v62 = vmul.f32 0.6931472, %v6966_v3  ;;  %v6081_v19 = vadd.f32 %v6071_v23, %v5985_v39  ;;  %v6968_v52 = vpop.eup %6967 }
 0x3a1   :  { %v5986_v7 = vmul.f32 %v6968_v52, %v5962_v51 }
 0x3a2   :  { %v6126_v37 = vadd.f32 %v6117_v62, %v6102_v30  ;;  %6088 = vst.msk [vmem:[#allocation3 + $0x3] sm:$0x1] %vm192_vm3, %v6081_v19 }
 0x3a4   :  { %v6138_v46 = vsub.f32 %v6126_v37, %v6132_v1 }
 0x3a6   :  { %6144 = vst.msk [vmem:[%s8147_s3 + $0x2] sm:$0x1] %vm192_vm3, %v6138_v46 }
 0x3a9   :  { %v6109_v26 = vld [vmem:[#allocation3 + $0x3] sm:$0x1] }
 0x3aa   :  { %6969 = vlog2.f32 %v6109_v26 }
 0x3ab   :  { %6971 = vpow2.f32 %v5980_v11 }
 0x3b7   :  { %v6970_v35 = vpop.eup %6969  ;;  %v6074_v40 = vpop.xlane.xlu0 %6073 }
 0x3b8   :  { %v6119_v44 = vmul.f32 0.6931472, %v6970_v35  ;;  %v6082_v63 = vadd.f32 %v6074_v40, %v5986_v7  ;;  %v6972_v49 = vpop.eup %6971 }
 0x3b9   :  { %v5987_v50 = vmul.f32 %v6972_v49, %v5963_v2 }
 0x3ba   :  { %v6127_v15 = vadd.f32 %v6119_v44, %v6103_v5  ;;  %6089 = vst.msk [vmem:[#allocation3 + $0x4] sm:$0x1] %vm192_vm3, %v6082_v63 }
 0x3bc   :  { %v6139_v27 = vsub.f32 %v6127_v15, %v6133_v48 }
 0x3be   :  { %6145 = vst.msk [vmem:[%s8147_s3 + $0x3] sm:$0x1] %vm192_vm3, %v6139_v27 }
 0x3c1   :  { %v6110_v22 = vld [vmem:[#allocation3 + $0x4] sm:$0x1] }
 0x3c2   :  { %6973 = vlog2.f32 %v6110_v22 }
 0x3cf   :  { %v6974_v53 = vpop.eup %6973  ;;  %v6077_v33 = vpop.xlane.xlu1 %6076 }
 0x3d0   :  { %v6121_v43 = vmul.f32 0.6931472, %v6974_v53  ;;  %v6083_v6 = vadd.f32 %v6077_v33, %v5987_v50 }
 0x3d2   :  { %v6128_v25 = vadd.f32 %v6121_v43, %v6104_v12  ;;  %6090 = vst.msk [vmem:[#allocation3 + $0x5] sm:$0x1] %vm192_vm3, %v6083_v6 }
 0x3d4   :  { %v6140_v38 = vsub.f32 %v6128_v25, %v6134_v24 }
 0x3d6   :  { %6146 = vst.msk [vmem:[%s8147_s3 + $0x4] sm:$0x1] %vm192_vm3, %v6140_v38 }
 0x3d9   :  { %v6111_v9 = vld [vmem:[#allocation3 + $0x5] sm:$0x1] }
 0x3da   :  { %6975 = vlog2.f32 %v6111_v9 }
 0x3e7   :  { %v6976_v13 = vpop.eup %6975 }
 0x3e8   :  { %v6123_v0 = vmul.f32 0.6931472, %v6976_v13 }
 0x3ea   :  { %v6129_v60 = vadd.f32 %v6123_v0, %v6105_v4 }
 0x3ec   :  { %v6141_v47 = vsub.f32 %v6129_v60, %v6135_v36 }
 0x3ee   :  { %6147 = vst.msk [vmem:[%s8147_s3 + $0x5] sm:$0x1] %vm192_vm3, %v6141_v47 }
 0x3ef   :  { %6152 = vsyncpa [#allocation7], 1 }
 0x3f0   :  { %6153 = vsyncpa [#allocation9], 1 }

</bundles_post_ra>
